<compile_context>
chip_gen: v6e
topology: v6e:2x2x1
jax: 0.10.0
libtpu: 0.0.40
codegen_flags: <defaults>
</compile_context>

<pallas_src>
import functools
import math

import jax
import jax.numpy as jnp
from jax.experimental import pallas as pl
from jax.experimental.pallas import tpu as pltpu


_TARGET_BLOCK_BYTES = 2 * 1024 * 1024  # ~2 MiB output blocks (>=85% of HBM roofline)


def _round_up(x: int, m: int) -> int:
    return ((x + m - 1) // m) * m


def _rel_pe_kernel(freq_ref, odd_ref, o_ref, *, tile_p: int, seq_len: int):
    """Compute one (tile_p, d_model) tile of the relative PE table.

    freq_ref: (1, d_model) f32, per-column frequency w_{c//2} (VMEM-resident).
    odd_ref:  (1, d_model) f32, 1.0 on odd columns, 0.0 on even columns.
    o_ref:    (1, tile_p, d_model) output block in the final dtype.
    """
    i = pl.program_id(0)

    # relative position per row of this tile: r = (T - 1) - global_row   (tile_p, 1)
    row = jax.lax.broadcasted_iota(jnp.int32, (tile_p, 1), 0)
    r = (jnp.float32(seq_len - 1)
         - (i * tile_p).astype(jnp.float32)
         - row.astype(jnp.float32))

    angle = r * freq_ref[...]                                   # (tile_p, d_model)
    # even columns -> sin(angle), odd columns -> cos(angle) (exact, matches reference)
    vals = jnp.where(odd_ref[...] > 0.5, jnp.cos(angle), jnp.sin(angle))
    o_ref[0] = vals.astype(o_ref.dtype)                         # fused output cast


@functools.lru_cache(maxsize=16)
def _rel_pe_table(seq_len: int, d_model: int, dtype_name: str) -> jax.Array:
    """pos_emb of shape (1, 2*seq_len - 1, d_model) in the requested dtype."""
    dtype = jnp.dtype(dtype_name)
    rows = 2 * seq_len - 1

    # Row-tile alignment for the output dtype's sublane packing (f32:8, bf16:16, 8-bit:32).
    align = max(8, 32 // max(1, dtype.itemsize))
    # Byte-sized output blocks; never larger than the (aligned) row count.
    tile_p = _TARGET_BLOCK_BYTES // (d_model * dtype.itemsize)
    tile_p = max(align, min(tile_p, _round_up(rows, align)))
    tile_p = _round_up(tile_p, align)
    grid = (pl.cdiv(rows, tile_p),)

    # Per-column constants, computed once here (not per grid step).  div_term is
    # built exactly as the PyTorch reference does, then repeated to full width.
    half = jnp.exp(jnp.arange(0, d_model, 2, dtype=jnp.float32)
                   * jnp.float32(-(math.log(10000.0) / d_model)))
    freqs = jnp.repeat(half, 2).reshape(1, d_model)              # w_{c//2} per column
    odd = (jnp.arange(d_model, dtype=jnp.int32) % 2).astype(jnp.float32).reshape(1, d_model)

    kern = functools.partial(_rel_pe_kernel, tile_p=tile_p, seq_len=seq_len)

    def build(semantics):
        return pl.pallas_call(
            kern,
            out_shape=jax.ShapeDtypeStruct((1, rows, d_model), dtype),
            grid_spec=pl.GridSpec(
                grid=grid,
                in_specs=[
                    # constant block index -> fetched once, stays VMEM-resident
                    pl.BlockSpec((1, d_model), lambda i: (0, 0)),
                    pl.BlockSpec((1, d_model), lambda i: (0, 0)),
                ],
                out_specs=pl.BlockSpec((1, tile_p, d_model), lambda i: (0, i, 0)),
            ),
            compiler_params=pltpu.CompilerParams(dimension_semantics=semantics),
        )

    # Prefer CORE_PARALLEL (engages both TensorCores on v7x); fall back to the
    # plain "parallel" semantics if the symbol / target rejects it.
    attempts = []
    core_sem = getattr(pltpu, "CORE_PARALLEL", None)
    if core_sem is not None:
        attempts.append((core_sem,))
    attempts.append(("parallel",))

    last_err = None
    for sem in attempts:
        try:
            return build(sem)(freqs, odd)
        except Exception as err:  # pragma: no cover - fallback path
            last_err = err
    raise last_err


def rel_positional_encoding(seq_len: int, d_model: int = 512,
                            dtype=jnp.float32) -> jax.Array:
    """Equivalent of the module's pos_emb table: (1, 2*seq_len - 1, d_model)."""
    return _rel_pe_table(int(seq_len), int(d_model), jnp.dtype(dtype).name)


def rel_positional_encoding_forward(x: jax.Array) -> jax.Array:
    """Equivalent of RelPositionalEncoding(d_model).forward(x) for x: (B, T, C)."""
    _, seq_len, d_model = x.shape
    # Cached across calls (like the PyTorch module's self.pe); output dtype == x.dtype.
    return rel_positional_encoding(seq_len, d_model, x.dtype)


def _reference(seq_len: int, d_model: int) -> jnp.ndarray:
    """Pure-JAX reference mirroring the PyTorch extend_pe + forward slice."""
    position = jnp.arange(seq_len, dtype=jnp.float32)[:, None]
    div_term = jnp.exp(jnp.arange(0, d_model, 2, dtype=jnp.float32)
                       * (-(math.log(10000.0) / d_model)))
    pe_pos = jnp.zeros((seq_len, d_model), jnp.float32)
    pe_pos = pe_pos.at[:, 0::2].set(jnp.sin(position * div_term))
    pe_pos = pe_pos.at[:, 1::2].set(jnp.cos(position * div_term))
    pe_neg = jnp.zeros((seq_len, d_model), jnp.float32)
    pe_neg = pe_neg.at[:, 0::2].set(jnp.sin(-position * div_term))
    pe_neg = pe_neg.at[:, 1::2].set(jnp.cos(-position * div_term))
    pe = jnp.concatenate([jnp.flip(pe_pos, axis=0)[None], pe_neg[1:][None]], axis=1)
    center = pe.shape[1] // 2
    return pe[:, center - seq_len + 1: center + seq_len]


if __name__ == "__main__":
    key = jax.random.PRNGKey(0)
    batch, seq_len, d_model = 2, 16, 128       # small, lane-dense demo shapes
    x = jax.random.normal(key, (batch, seq_len, d_model), dtype=jnp.float32)

    out = rel_positional_encoding_forward(x)
    out = jax.block_until_ready(out)

    ref = _reference(seq_len, d_model)
    assert out.shape == (1, 2 * seq_len - 1, d_model), out.shape
    assert out.dtype == jnp.float32
    assert jnp.allclose(out, ref, atol=1e-5, rtol=1e-5), "f32 mismatch vs reference"

    # bf16 input exercises the fused in-kernel cast (no separate convert pass).
    seq_len_b = 24
    xb = jax.random.normal(jax.random.PRNGKey(1), (batch, seq_len_b, d_model),
                           dtype=jnp.bfloat16)
    outb = jax.block_until_ready(rel_positional_encoding_forward(xb))
    refb = _reference(seq_len_b, d_model)
    assert outb.shape == (1, 2 * seq_len_b - 1, d_model), outb.shape
    assert outb.dtype == jnp.bfloat16
    assert jnp.allclose(outb.astype(jnp.float32), refb, atol=1e-2, rtol=0.0), \
        "bf16 mismatch vs reference"

    print("KERNEL_OK")
</pallas_src>

<mosaic_0001>
module attributes {stable_mosaic.version = 11 : i64} {
  func.func @_rel_pe_kernel(%arg0: i32, %arg1: memref<1x128xf32, #tpu.memory_space<vmem>>, %arg2: memref<1x128xf32, #tpu.memory_space<vmem>>, %arg3: memref<1x32x128xf32, #tpu.memory_space<vmem>>) attributes {dimension_semantics = [#tpu.dimension_semantics<core_parallel>], iteration_bounds = array<i64: 1>, scalar_prefetch = 0 : i64, scratch_operands = 0 : i64, tpu.core_type = #tpu.core_type<tc>, window_params = [{pipeline_mode = #tpu.pipeline_mode<synchronous>, transform_indices = @transform_0, window_bounds = array<i64: 1, 128>}, {pipeline_mode = #tpu.pipeline_mode<synchronous>, transform_indices = @transform_1, window_bounds = array<i64: 1, 128>}, {transform_indices = @transform_2, window_bounds = array<i64: 1, 32, 128>}]} {
    %0 = tpu.iota {dimensions = array<i32: 0>} : vector<32x1xi32>
    %c32_i32 = arith.constant 32 : i32
    %1 = arith.muli %arg0, %c32_i32 : i32
    %2 = arith.sitofp %1 : i32 to f32
    %cst = arith.constant 1.500000e+01 : f32
    %3 = arith.subf %cst, %2 : f32
    %4 = arith.sitofp %0 : vector<32x1xi32> to vector<32x1xf32>
    %5 = vector.broadcast %3 : f32 to vector<32x1xf32>
    %6 = arith.subf %5, %4 : vector<32x1xf32>
    %c0 = arith.constant 0 : index
    %c0_0 = arith.constant 0 : index
    %7 = vector.load %arg1[%c0, %c0_0] : memref<1x128xf32, #tpu.memory_space<vmem>>, vector<1x128xf32>
    %8 = vector.broadcast %6 : vector<32x1xf32> to vector<32x128xf32>
    %9 = vector.broadcast %7 : vector<1x128xf32> to vector<32x128xf32>
    %10 = arith.mulf %8, %9 : vector<32x128xf32>
    %c0_1 = arith.constant 0 : index
    %c0_2 = arith.constant 0 : index
    %11 = vector.load %arg2[%c0_1, %c0_2] : memref<1x128xf32, #tpu.memory_space<vmem>>, vector<1x128xf32>
    %cst_3 = arith.constant 5.000000e-01 : f32
    %12 = vector.broadcast %cst_3 : f32 to vector<1x128xf32>
    %13 = arith.cmpf ogt, %11, %12 : vector<1x128xf32>
    %14 = math.cos %10 : vector<32x128xf32>
    %15 = math.sin %10 : vector<32x128xf32>
    %16 = vector.shape_cast %13 : vector<1x128xi1> to vector<1x128xi1>
    %17 = vector.broadcast %16 : vector<1x128xi1> to vector<32x128xi1>
    %18 = arith.select %17, %14, %15 : vector<32x128xi1>, vector<32x128xf32>
    %c0_4 = arith.constant 0 : index
    %c0_5 = arith.constant 0 : index
    %c0_6 = arith.constant 0 : index
    %19 = vector.load %arg3[%c0_4, %c0_5, %c0_6] : memref<1x32x128xf32, #tpu.memory_space<vmem>>, vector<1x32x128xf32>
    %20 = vector.shape_cast %19 : vector<1x32x128xf32> to vector<32x128xf32>
    %21 = vector.shape_cast %18 : vector<32x128xf32> to vector<1x32x128xf32>
    tpu.vector_store %arg3[%c0_4, %c0_5, %c0_6], %21 {strides = array<i32>} : memref<1x32x128xf32, #tpu.memory_space<vmem>>, vector<1x32x128xf32>,
    return
  }
  func.func @transform_0(%arg0: i32) -> (i32, i32) {
    %c0_i32 = arith.constant 0 : i32
    %c0_i32_0 = arith.constant 0 : i32
    %c0_i32_1 = arith.constant 0 : i32
    return %c0_i32, %c0_i32_0 : i32, i32
  }
  func.func @transform_1(%arg0: i32) -> (i32, i32) {
    %c0_i32 = arith.constant 0 : i32
    %c0_i32_0 = arith.constant 0 : i32
    %c0_i32_1 = arith.constant 0 : i32
    return %c0_i32, %c0_i32_0 : i32, i32
  }
  func.func @transform_2(%arg0: i32) -> (i32, i32, i32) {
    %c0_i32 = arith.constant 0 : i32
    %c0_i32_0 = arith.constant 0 : i32
    %c0_i32_1 = arith.constant 0 : i32
    return %c0_i32, %arg0, %c0_i32_0 : i32, i32, i32
  }
}

module attributes {stable_mosaic.version = 11 : i64} {
  func.func @_rel_pe_kernel(%arg0: i32, %arg1: memref<1x128xf32, #tpu.memory_space<vmem>>, %arg2: memref<1x128xf32, #tpu.memory_space<vmem>>, %arg3: memref<1x32x128xf32, #tpu.memory_space<vmem>>) attributes {dimension_semantics = [#tpu.dimension_semantics<parallel>], iteration_bounds = array<i64: 1>, scalar_prefetch = 0 : i64, scratch_operands = 0 : i64, tpu.core_type = #tpu.core_type<tc>, window_params = [{pipeline_mode = #tpu.pipeline_mode<synchronous>, transform_indices = @transform_0, window_bounds = array<i64: 1, 128>}, {pipeline_mode = #tpu.pipeline_mode<synchronous>, transform_indices = @transform_1, window_bounds = array<i64: 1, 128>}, {transform_indices = @transform_2, window_bounds = array<i64: 1, 32, 128>}]} {
    %0 = tpu.iota {dimensions = array<i32: 0>} : vector<32x1xi32>
    %c32_i32 = arith.constant 32 : i32
    %1 = arith.muli %arg0, %c32_i32 : i32
    %2 = arith.sitofp %1 : i32 to f32
    %cst = arith.constant 1.500000e+01 : f32
    %3 = arith.subf %cst, %2 : f32
    %4 = arith.sitofp %0 : vector<32x1xi32> to vector<32x1xf32>
    %5 = vector.broadcast %3 : f32 to vector<32x1xf32>
    %6 = arith.subf %5, %4 : vector<32x1xf32>
    %c0 = arith.constant 0 : index
    %c0_0 = arith.constant 0 : index
    %7 = vector.load %arg1[%c0, %c0_0] : memref<1x128xf32, #tpu.memory_space<vmem>>, vector<1x128xf32>
    %8 = vector.broadcast %6 : vector<32x1xf32> to vector<32x128xf32>
    %9 = vector.broadcast %7 : vector<1x128xf32> to vector<32x128xf32>
    %10 = arith.mulf %8, %9 : vector<32x128xf32>
    %c0_1 = arith.constant 0 : index
    %c0_2 = arith.constant 0 : index
    %11 = vector.load %arg2[%c0_1, %c0_2] : memref<1x128xf32, #tpu.memory_space<vmem>>, vector<1x128xf32>
    %cst_3 = arith.constant 5.000000e-01 : f32
    %12 = vector.broadcast %cst_3 : f32 to vector<1x128xf32>
    %13 = arith.cmpf ogt, %11, %12 : vector<1x128xf32>
    %14 = math.cos %10 : vector<32x128xf32>
    %15 = math.sin %10 : vector<32x128xf32>
    %16 = vector.shape_cast %13 : vector<1x128xi1> to vector<1x128xi1>
    %17 = vector.broadcast %16 : vector<1x128xi1> to vector<32x128xi1>
    %18 = arith.select %17, %14, %15 : vector<32x128xi1>, vector<32x128xf32>
    %c0_4 = arith.constant 0 : index
    %c0_5 = arith.constant 0 : index
    %c0_6 = arith.constant 0 : index
    %19 = vector.load %arg3[%c0_4, %c0_5, %c0_6] : memref<1x32x128xf32, #tpu.memory_space<vmem>>, vector<1x32x128xf32>
    %20 = vector.shape_cast %19 : vector<1x32x128xf32> to vector<32x128xf32>
    %21 = vector.shape_cast %18 : vector<32x128xf32> to vector<1x32x128xf32>
    tpu.vector_store %arg3[%c0_4, %c0_5, %c0_6], %21 {strides = array<i32>} : memref<1x32x128xf32, #tpu.memory_space<vmem>>, vector<1x32x128xf32>,
    return
  }
  func.func @transform_0(%arg0: i32) -> (i32, i32) {
    %c0_i32 = arith.constant 0 : i32
    %c0_i32_0 = arith.constant 0 : i32
    %c0_i32_1 = arith.constant 0 : i32
    return %c0_i32, %c0_i32_0 : i32, i32
  }
  func.func @transform_1(%arg0: i32) -> (i32, i32) {
    %c0_i32 = arith.constant 0 : i32
    %c0_i32_0 = arith.constant 0 : i32
    %c0_i32_1 = arith.constant 0 : i32
    return %c0_i32, %c0_i32_0 : i32, i32
  }
  func.func @transform_2(%arg0: i32) -> (i32, i32, i32) {
    %c0_i32 = arith.constant 0 : i32
    %c0_i32_0 = arith.constant 0 : i32
    %c0_i32_1 = arith.constant 0 : i32
    return %c0_i32, %arg0, %c0_i32_0 : i32, i32, i32
  }
}

</mosaic_0001>

<bundles_post_ra>
// kernel: tpu_custom_call.1
= control target key start
LH: loop header
LB: loop body
LE: loop exit
PB: predicated region body
PF: predicated region fallthrough
CT: control target
= control target key end

     0   :  { %s1051_s9 = sld [smem:[#allocation0]]   ;;  %s1441_s0 = inlined_call_operand.hbm [shape: f32[1,128], index: 0, kind: input, shape index: {}]   ;;  %s1442_s1 = inlined_call_operand.vmem [shape: f32[1,128], index: 1, kind: input, shape index: {}]   ;;  %s1443_s2 = inlined_call_operand.vmem [shape: f32[1,31,128], index: 2, kind: output, shape index: {}]  }
   0x1   :  { %7 = vsyncpa [#allocation3], 0  ;;  %s1028_s10 = smov [#allocation2]  }
   0x2   :  { %s14_s11 = sshll.u32 %s1028_s10, 4  ;;  %s15_s11 = int_to_ptr.vmem [resolvable:$true] %s14_s11 }
   0x3   :  { %s1014_s12 = scalar_lea.vmem %s15_s11, 16  ;;  %s1018_s13 = scalar_lea.vmem %s15_s11, 32 }
   0x4   :  { %p1015_p0 = scmp.ne.s32.totalorder %s15_s11, %s1014_s12  ;;  %p1019_p1 = scmp.lt.s32.totalorder %s15_s11, %s15_s11 }
   0x5   :  { %p1020_p2 = scmp.lt.s32.totalorder %s1018_s13, %s1014_s12 }
   0x7   :  { %p1021_p3 = por %p1020_p2, %p1019_p1 }
   0x9   :  { %p1022_p4 = pnand %p1021_p3, %p1015_p0 }
   0xb   :  { %1025 = shalt.err (!%p1022_p4)
}
   0xc   :  { %17 = dma.hbm_to_vmem [thread:$0]  %s1441_s0, 16, %s15_s11, [#allocation3]  }
   0xd   :  { %1026 = dma.done.wait [#allocation3], 16  }
   0xe   :  { %1027 = vsyncadd [#allocation3], 4294967280  ;;  %v34_v0 = vlaneseq  ;;  %s932_s16 = sshll.u32 %s1051_s9, 5  ;;  %v1062_v9 = vld [vmem:[#allocation2] ss:$0 sm:$0xff] }
   0xf   :  { %s40_s17 = scvt.s32.f32 %s932_s16  ;;  %v1029_v45 = vmov 683565275   ;;  %v1030_v47 = vmov 2475754826   ;;  %v1031_v49 = vmov 2131351028  }
  0x10   :  { %v1057_v1 = vshrl.u32 %v34_v0, 7  ;;  %v1032_v51 = vmov 2102212464   ;;  %v1033_v53 = vmov 920167782  }
  0x11   :  { %s41_s18 = ssub.f32 15.0, %s40_s17  ;;  %v1034_v61 = vmov 1326507024  }
  0x12   :  { %v36_v2 = vadd.s32 8, %v1057_v1  ;;  %v37_v3 = vadd.s32 16, %v1057_v1  ;;  %v42_v4 = vcvt.s32.f32 %v1057_v1  ;;  %v38_v17 = vadd.s32 24, %v1057_v1 }
  0x13   :  { %v46_v7 = vstv %s41_s18 }
  0x14   :  { %v43_v5 = vcvt.s32.f32 %v36_v2  ;;  %v44_v6 = vcvt.s32.f32 %v37_v3  ;;  %v47_v8 = vsub.f32 %v46_v7, %v42_v4  ;;  %v45_v26 = vcvt.s32.f32 %v38_v17 }
  0x16   :  { %v48_v10 = vsub.f32 %v46_v7, %v43_v5  ;;  %v49_v11 = vsub.f32 %v46_v7, %v44_v6  ;;  %v1065_v12 = vmul.f32 %v1062_v9, %v47_v8  ;;  %v1083_v34 = vsub.f32 %v46_v7, %v45_v26 }
  0x18   :  { %v1068_v13 = vmul.f32 %v1062_v9, %v48_v10  ;;  %v1071_v14 = vmul.f32 %v1062_v9, %v49_v11  ;;  %v64_v15 = vand.u32 2147483647, %v1065_v12  ;;  %v67_v16 = vand.u32 2139095040, %v1065_v12 }
  0x1a   :  { %v167_v18 = vand.u32 2147483647, %v1068_v13  ;;  %v170_v19 = vand.u32 2139095040, %v1068_v13  ;;  %v68_v20 = vshrl.u32 %v67_v16, 23  ;;  %v71_v21 = vand.u32 8388607, %v64_v15 }
  0x1b   :  { %v273_v24 = vand.u32 2139095040, %v1071_v14  ;;  %v270_v39 = vand.u32 2147483647, %v1071_v14 }
  0x1c   :  { %v171_v22 = vshrl.u32 %v170_v19, 23  ;;  %v174_v23 = vand.u32 8388607, %v167_v18  ;;  %v934_v25 = vadd.s32 4294967169, %v68_v20  ;;  %v72_v30 = vor.u32 8388608, %v71_v21 }
  0x1d   :  { %v274_v28 = vshrl.u32 %v273_v24, 23 }
  0x1e   :  { %v938_v27 = vadd.s32 4294967169, %v171_v22  ;;  %v74_v29 = vadd.s32 1, %v934_v25  ;;  %v175_v31 = vor.u32 8388608, %v174_v23  ;;  %v1086_v40 = vshll.u32 %v72_v30, 8 }
  0x1f   :  { %v942_v33 = vadd.s32 4294967169, %v274_v28 }
  0x20   :  { %v177_v32 = vadd.s32 1, %v938_v27  ;;  %vm75_vm0 = vcmp.gt.s32.totalorder %v74_v29, 0  ;;  %v1088_v42 = vshll.u32 %v175_v31, 8 }
  0x21   :  { %v76_v35 = vsel %vm75_vm0, %v74_v29, 0  ;;  %v1090_v43 = vadd.s32 1, %v942_v33 }
  0x22   :  { %vm178_vm1 = vcmp.gt.s32.totalorder %v177_v32, 0  ;;  %v77_v36 = vshrl.u32 %v76_v35, 5  ;;  %v78_v37 = vand.u32 31, %v76_v35 }
  0x23   :  { %v179_v38 = vsel %vm178_vm1, %v177_v32, 0  ;;  %vm281_vm6 = vcmp.gt.s32.totalorder %v1090_v43, 0  ;;  %vm66_vm1 = vcmp.lt.s32.totalorder %v1065_v12, 0 }
  0x24   :  { %v181_v41 = vand.u32 31, %v179_v38  ;;  %v79_v44 = vsub.s32 32, %v78_v37  ;;  %v81_v46 = vshll.u32 %v1029_v45, %v78_v37  ;;  %v84_v48 = vshll.u32 %v1030_v47, %v78_v37 }
  0x25   :  { %v87_v50 = vshll.u32 %v1031_v49, %v78_v37  ;;  %v90_v52 = vshll.u32 %v1032_v51, %v78_v37  ;;  %v93_v54 = vshll.u32 %v1033_v53, %v78_v37  ;;  %vm96_vm2 = vcmp.lt.s32.totalorder %v77_v36, 1 }
  0x26   :  { %v1097_v55 = vshrl.u32 %v179_v38, 5  ;;  %v80_v56 = vshrl.u32 %v1029_v45, %v79_v44  ;;  %v82_v57 = vshrl.u32 %v1030_v47, %v79_v44  ;;  %v85_v58 = vshrl.u32 %v1031_v49, %v79_v44 }
  0x27   :  { %v88_v59 = vshrl.u32 %v1032_v51, %v79_v44  ;;  %v91_v60 = vshrl.u32 %v1033_v53, %v79_v44  ;;  %v94_v62 = vshrl.u32 %v1034_v61, %v79_v44  ;;  %vm97_vm3 = vcmp.lt.s32.totalorder %v77_v36, 2 }
  0x28   :  { %vm99_vm4 = vcmp.lt.s32.totalorder %v77_v36, 4  ;;  %v83_v63 = vor.u32 %v82_v57, %v81_v46  ;;  %v86_v0 = vor.u32 %v85_v58, %v84_v48  ;;  %v182_v3 = vsub.s32 32, %v181_v41 }
  0x29   :  { %v89_v2 = vor.u32 %v88_v59, %v87_v50  ;;  %v92_v4 = vor.u32 %v91_v60, %v90_v52  ;;  %v95_v5 = vor.u32 %v94_v62, %v93_v54  ;;  %vm98_vm5 = vcmp.lt.s32.totalorder %v77_v36, 3 }
  0x2a   :  { %v184_v6 = vshll.u32 %v1029_v45, %v181_v41  ;;  %v100_v7 = vsel %vm96_vm2, %v80_v56, %v83_v63  ;;  %v104_v10 = vsel %vm96_vm2, %v83_v63, %v86_v0  ;;  %v187_v20 = vshll.u32 %v1030_v47, %v181_v41 }
  0x2b   :  { %v101_v8 = vsel %vm99_vm4, %v89_v2, 2102212464  ;;  %v108_v11 = vsel %vm96_vm2, %v86_v0, %v89_v2  ;;  %v105_v17 = vsel %vm99_vm4, %v92_v4, 920167782  ;;  %v109_v19 = vsel %vm99_vm4, %v95_v5, 1326507024 }
  0x2c   :  { %v102_v16 = vsel %vm98_vm5, %v86_v0, %v101_v8  ;;  %v106_v21 = vsel %vm98_vm5, %v89_v2, %v105_v17  ;;  %v110_v22 = vsel %vm98_vm5, %v92_v4, %v109_v19  ;;  %v183_v23 = vshrl.u32 %v1029_v45, %v182_v3 }
  0x2d   :  { %v185_v24 = vshrl.u32 %v1030_v47, %v182_v3  ;;  %v103_v25 = vsel %vm97_vm3, %v100_v7, %v102_v16  ;;  %v107_v26 = vsel %vm97_vm3, %v104_v10, %v106_v21  ;;  %v111_v27 = vsel %vm97_vm3, %v108_v11, %v110_v22 }
  0x2e   :  { %v188_v28 = vshrl.u32 %v1031_v49, %v182_v3  ;;  %v1118_v29 = vmul.u32.u64.low %v1086_v40, %v111_v27  ;;  %v1119_v30 = vmul.u32.u64.high %v1086_v40, %v111_v27, %v1118_v29  ;;  %v190_v37 = vshll.u32 %v1031_v49, %v181_v41 }
  0x2f   :  { %v1122_v31 = vmul.u32.u64.low %v1086_v40, %v107_v26  ;;  %v1123_v32 = vmul.u32.u64.high %v1086_v40, %v107_v26, %v1122_v31  ;;  %v186_v33 = vor.u32 %v185_v24, %v184_v6  ;;  %v191_v38 = vshrl.u32 %v1032_v51, %v182_v3 }
  0x30   :  { %v189_v35 = vor.u32 %v188_v28, %v187_v20  ;;  %v193_v36 = vshll.u32 %v1032_v51, %v181_v41  ;;  %v194_v44 = vshrl.u32 %v1033_v53, %v182_v3  ;;  %v196_v46 = vshll.u32 %v1033_v53, %v181_v41 }
  0x31   :  { %v197_v48 = vshrl.u32 %v1034_v61, %v182_v3  ;;  %v119_v50 = vmul.u32 %v1086_v40, %v103_v25  ;;  %v192_v52 = vor.u32 %v191_v38, %v190_v37  ;;  %vm199_vm7 = vcmp.lt.s32.totalorder %v1097_v55, 1 }
  0x32   :  { %vm200_vm8 = vcmp.lt.s32.totalorder %v1097_v55, 2  ;;  %vm121_vm9 = vc.u32 %v1119_v30, %v1122_v31  ;;  %v122_v54 = vadd.s32 1, %v1123_v32  ;;  %v195_v56 = vor.u32 %v194_v44, %v193_v36 }
  0x33   :  { %vm201_vm10 = vcmp.lt.s32.totalorder %v1097_v55, 3  ;;  %v198_v57 = vor.u32 %v197_v48, %v196_v46  ;;  %vm202_vm11 = vcmp.lt.s32.totalorder %v1097_v55, 4  ;;  %v203_v41 = vsel %vm199_vm7, %v183_v23, %v186_v33 }
  0x34   :  { %v207_v58 = vsel %vm199_vm7, %v186_v33, %v189_v35  ;;  %v123_v40 = vsel %vm121_vm9, %v122_v54, %v1123_v32  ;;  %v204_v59 = vsel %vm202_vm11, %v192_v52, 2102212464  ;;  %v208_v60 = vsel %vm202_vm11, %v195_v56, 920167782 }
  0x35   :  { %v211_v62 = vsel %vm199_vm7, %v189_v35, %v192_v52  ;;  %v124_v63 = vadd.s32 %v123_v40, %v119_v50  ;;  %v205_v0 = vsel %vm201_vm10, %v189_v35, %v204_v59  ;;  %v209_v2 = vsel %vm201_vm10, %v192_v52, %v208_v60 }
  0x36   :  { %v212_v3 = vsel %vm202_vm11, %v198_v57, 1326507024  ;;  %v206_v4 = vsel %vm200_vm8, %v203_v41, %v205_v0  ;;  %v210_v5 = vsel %vm200_vm8, %v207_v58, %v209_v2  ;;  %v282_v7 = vsel %vm281_vm6, %v1090_v43, 0 }
  0x37   :  { %v213_v6 = vsel %vm201_vm10, %v195_v56, %v212_v3  ;;  %v125_v8 = vadd.s32 536870912, %v124_v63  ;;  %v1151_v11 = vmul.u32.u64.low %v1088_v42, %v210_v5  ;;  %v1152_v16 = vmul.u32.u64.high %v1088_v42, %v210_v5, %v1151_v11 }
  0x38   :  { %v214_v10 = vsel %vm200_vm8, %v211_v62, %v213_v6  ;;  %v1157_v17 = vmul.f32 %v1062_v9, %v1083_v34  ;;  %v277_v43 = vand.u32 8388607, %v270_v39  ;;  %v284_v55 = vand.u32 31, %v282_v7 }
  0x39   :  { %v1160_v19 = vmul.u32.u64.low %v1088_v42, %v214_v10  ;;  %v1161_v20 = vmul.u32.u64.high %v1088_v42, %v214_v10, %v1160_v19  ;;  %v1165_v21 = vshrl.u32 %v125_v8, 30  ;;  %v222_v22 = vmul.u32 %v1088_v42, %v206_v4 }
  0x3a   :  { %v225_v24 = vadd.s32 1, %v1152_v16  ;;  %v285_v25 = vsub.s32 32, %v284_v55  ;;  %v278_v9 = vor.u32 8388608, %v277_v43  ;;  %v376_v34 = vand.u32 2139095040, %v1157_v17 }
  0x3b   :  { %v127_v23 = vshll.u32 %v1165_v21, 30  ;;  %vm224_vm12 = vc.u32 %v1161_v20, %v1151_v11  ;;  %v283_v28 = vshrl.u32 %v282_v7, 5  ;;  %v287_v32 = vshll.u32 %v1029_v45, %v284_v55 }
  0x3c   :  { %v226_v27 = vsel %vm224_vm12, %v225_v24, %v1152_v16  ;;  %v288_v42 = vshrl.u32 %v1030_v47, %v285_v25  ;;  %v290_v33 = vshll.u32 %v1030_v47, %v284_v55  ;;  %v291_v37 = vshrl.u32 %v1031_v49, %v285_v25 }
  0x3d   :  { %v1173_v26 = vsub.s32 %v124_v63, %v127_v23  ;;  %v227_v29 = vadd.s32 %v226_v27, %v222_v22  ;;  %v293_v38 = vshll.u32 %v1031_v49, %v284_v55  ;;  %v294_v36 = vshrl.u32 %v1032_v51, %v285_v25 }
  0x3e   :  { %v296_v46 = vshll.u32 %v1032_v51, %v284_v55  ;;  %v1184_v48 = vshll.u32 %v278_v9, 8  ;;  %v377_v50 = vshrl.u32 %v376_v34, 23  ;;  %v120_v52 = vadd.s32 %v1122_v31, %v1119_v30 }
  0x3f   :  { %v130_v35 = vsub.s32 0, %v1173_v26  ;;  %v228_v44 = vadd.s32 536870912, %v227_v29  ;;  %v286_v56 = vshrl.u32 %v1029_v45, %v285_v25  ;;  %vm305_vm13 = vcmp.lt.s32.totalorder %v283_v28, 4 }
  0x40   :  { %v289_v41 = vor.u32 %v288_v42, %v287_v32  ;;  %v297_v58 = vshrl.u32 %v1033_v53, %v285_v25  ;;  %v299_v40 = vshll.u32 %v1033_v53, %v284_v55  ;;  %v292_v60 = vor.u32 %v291_v37, %v290_v33 }
  0x41   :  { %v935_v54 = vmin.u32 %v130_v35, %v1173_v26  ;;  %v1190_v57 = vshrl.u32 %v228_v44, 30  ;;  %v295_v62 = vor.u32 %v294_v36, %v293_v38  ;;  %v300_v63 = vshrl.u32 %v1034_v61, %v285_v25 }
  0x42   :  { %v298_v30 = vor.u32 %v297_v58, %v296_v46  ;;  %vm302_vm14 = vcmp.lt.s32.totalorder %v283_v28, 1  ;;  %vm304_vm15 = vcmp.lt.s32.totalorder %v283_v28, 3  ;;  %v946_v4 = vadd.s32 4294967169, %v377_v50 }
  0x43   :  { %v132_v59 = vclz %v935_v54  ;;  %v230_v0 = vshll.u32 %v1190_v57, 30  ;;  %v301_v2 = vor.u32 %v300_v63, %v299_v40  ;;  %v307_v3 = vsel %vm305_vm13, %v295_v62, 2102212464 }
  0x44   :  { %vm303_vm0 = vcmp.lt.s32.totalorder %v283_v28, 2  ;;  %v306_v6 = vsel %vm302_vm14, %v286_v56, %v289_v41  ;;  %v311_v7 = vsel %vm305_vm13, %v298_v30, 920167782  ;;  %v310_v8 = vsel %vm302_vm14, %v289_v41, %v292_v60 }
  0x45   :  { %v936_v31 = vadd.s32 4294967294, %v132_v59  ;;  %v1197_v5 = vsub.s32 %v227_v29, %v230_v0  ;;  %v312_v10 = vsel %vm304_vm15, %v295_v62, %v311_v7  ;;  %v315_v16 = vsel %vm305_vm13, %v301_v2, 1326507024 }
  0x46   :  { %v308_v55 = vsel %vm304_vm15, %v292_v60, %v307_v3  ;;  %v314_v22 = vsel %vm302_vm14, %v292_v60, %v295_v62  ;;  %v316_v9 = vsel %vm304_vm15, %v298_v30, %v315_v16  ;;  %v150_v34 = vsub.s32 4, %v1165_v21 }
  0x47   :  { %vm937_vm2 = vcmp.lt.s32.totalorder %v936_v31, 0  ;;  %v233_v43 = vsub.s32 0, %v1197_v5  ;;  %v313_v29 = vsel %vm303_vm0, %v310_v8, %v312_v10  ;;  %v373_v32 = vand.u32 2147483647, %v1157_v17 }
  0x48   :  { %v135_v19 = vsel %vm937_vm2, 0, %v936_v31  ;;  %v309_v35 = vsel %vm303_vm0, %v306_v6, %v308_v55  ;;  %v317_v37 = vsel %vm303_vm0, %v314_v22, %v316_v9  ;;  %v383_v44 = vadd.s32 1, %v946_v4 }
  0x49   :  { %v136_v23 = vsub.s32 32, %v135_v19  ;;  %v137_v24 = vshll.u32 %v1173_v26, %v135_v19  ;;  %v140_v25 = vsub.s32 4294967266, %v135_v19  ;;  %v939_v27 = vmin.u32 %v233_v43, %v1197_v5 }
  0x4a   :  { %v1217_v26 = vmul.u32.u64.low %v1184_v48, %v317_v37  ;;  %v1218_v36 = vmul.u32.u64.high %v1184_v48, %v317_v37, %v1217_v26  ;;  %v1221_v54 = vmul.u32.u64.low %v1184_v48, %v313_v29  ;;  %v1222_v56 = vmul.u32.u64.high %v1184_v48, %v313_v29, %v1221_v54 }
  0x4b   :  { %v138_v42 = vshrl.u32 %v120_v52, %v136_v23  ;;  %v141_v33 = vadd.s32 127, %v140_v25  ;;  %v235_v38 = vclz %v939_v27  ;;  %vm1227_vm3 = vcmp.le.f32.partialorder %v64_v15, 0.7853982 }
  0x4c   :  { %v1233_v41 = vand.u32 8388607, %v373_v32  ;;  %vm384_vm4 = vcmp.gt.s32.totalorder %v383_v44, 0  ;;  %v223_v59 = vadd.s32 %v1151_v11, %v1161_v20  ;;  %v151_v62 = vsel %vm66_vm1, %v150_v34, %v1165_v21 }
  0x4d   :  { %v139_v46 = vor.u32 %v138_v42, %v137_v24  ;;  %v142_v50 = vshll.u32 %v141_v33, 23  ;;  %v940_v28 = vadd.s32 4294967294, %v235_v38  ;;  %v385_v60 = vsel %vm384_vm4, %v383_v44, 0 }
  0x4e   :  { %v325_v15 = vmul.u32 %v1184_v48, %v309_v35  ;;  %vm327_vm6 = vc.u32 %v1218_v36, %v1221_v54  ;;  %v328_v30 = vadd.s32 1, %v1222_v56  ;;  %v387_v31 = vand.u32 31, %v385_v60 }
  0x4f   :  { %v143_v58 = vor.u32 4788187, %v142_v50  ;;  %v146_v40 = vcvt.s32.f32 %v139_v46  ;;  %vm941_vm5 = vcmp.lt.s32.totalorder %v940_v28, 0  ;;  %v381_v20 = vor.u32 8388608, %v1233_v41 }
  0x50   :  { %v238_v0 = vsel %vm941_vm5, 0, %v940_v28  ;;  %v153_v21 = vsel %vm1227_vm3, 0, %v151_v62  ;;  %v329_v48 = vsel %vm327_vm6, %v328_v30, %v1222_v56  ;;  %v388_v6 = vsub.s32 32, %v387_v31 }
  0x51   :  { %v144_v63 = vand.u32 2147483647, %v143_v58  ;;  %v239_v2 = vsub.s32 32, %v238_v0  ;;  %v240_v3 = vshll.u32 %v1197_v5, %v238_v0  ;;  %v243_v11 = vsub.s32 4294967266, %v238_v0 }
  0x52   :  { %vm169_vm7 = vcmp.lt.s32.totalorder %v1068_v13, 0  ;;  %v253_v10 = vsub.s32 4, %v1190_v57  ;;  %v330_v16 = vadd.s32 %v329_v48, %v325_v15  ;;  %v1251_v43 = vshrl.u32 %v385_v60, 5 }
  0x53   :  { %v147_v4 = vmul.f32 %v146_v40, %v144_v63  ;;  %v241_v7 = vshrl.u32 %v223_v59, %v239_v2  ;;  %v244_v8 = vadd.s32 127, %v243_v11  ;;  %v390_v5 = vshll.u32 %v1029_v45, %v387_v31  ;;  %v1304_v2 = vld [vmem:[%s1442_s1] sm:$0x1]  ;;  %s930_s1 = sshll.u32 %s1051_s9, 2 }
  0x54   :  { %v393_v55 = vshll.u32 %v1030_v47, %v387_v31  ;;  %vm1257_vm8 = vcmp.le.f32.partialorder %v167_v18, 0.7853982  ;;  %v331_v25 = vadd.s32 536870912, %v330_v16  ;;  %v391_v9 = vshrl.u32 %v1030_v47, %v388_v6  ;;  %p1352_p5 = scmp.lt.s32.totalorder %s930_s1, 3 }
  0x55   :  { %v148_v19 = vxor.u32 2147483648, %v147_v4  ;;  %v242_v23 = vor.u32 %v241_v7, %v240_v3  ;;  %v245_v24 = vshll.u32 %v244_v8, 23  ;;  %v394_v27 = vshrl.u32 %v1031_v49, %v388_v6 }
  0x56   :  { %v396_v29 = vshll.u32 %v1031_v49, %v387_v31  ;;  %v397_v42 = vshrl.u32 %v1032_v51, %v388_v6  ;;  %v1270_v37 = vshrl.u32 %v331_v25, 30  ;;  %v399_v47 = vshll.u32 %v1032_v51, %v387_v31  ;;  %s1452_s1 = smov (!%p1352_p5, %s930_s1), 3 }
  0x57   :  { %v149_v34 = vsel %vm66_vm1, %v148_v19, %v147_v4  ;;  %v246_v33 = vor.u32 4788187, %v245_v24  ;;  %v249_v35 = vcvt.s32.f32 %v242_v23  ;;  %v400_v38 = vshrl.u32 %v1033_v53, %v388_v6  ;;  %s931_s21 = sshll.u32 %s1452_s1, 3 }
  0x58   :  { %v152_v18 = vsel %vm1227_vm3, %v1065_v12, %v149_v34  ;;  %vm405_vm9 = vcmp.lt.s32.totalorder %v1251_v43, 1  ;;  %v333_v49 = vshll.u32 %v1270_v37, 30  ;;  %v392_v44 = vor.u32 %v391_v9, %v390_v5  ;;  %s1402_s24 = scalar_lea.vmem %s1443_s2, %s931_s21 }
  0x59   :  { %990 = vcosq.f32 %v152_v18  ;;  %v247_v26 = vand.u32 2147483647, %v246_v33  ;;  %v395_v46 = vor.u32 %v394_v27, %v393_v55  ;;  %v401_v50 = vor.u32 %v400_v38, %v399_v47 }
  0x5a   :  { %992 = vsinq.f32 %v152_v18  ;;  %v402_v56 = vshll.u32 %v1033_v53, %v387_v31  ;;  %v403_v52 = vshrl.u32 %v1034_v61, %v388_v6  ;;  %v1278_v41 = vsub.s32 %v330_v16, %v333_v49 }
  0x5b   :  { %v250_v28 = vmul.f32 %v249_v35, %v247_v26  ;;  %v389_v51 = vshrl.u32 %v1029_v45, %v388_v6  ;;  %v398_v58 = vor.u32 %v397_v42, %v396_v29  ;;  %v1281_v40 = vand.u32 3, %v153_v21 }
  0x5c   :  { %v254_v59 = vsel %vm169_vm7, %v253_v10, %v1190_v57  ;;  %vm407_vm10 = vcmp.lt.s32.totalorder %v1251_v43, 3  ;;  %vm408_vm11 = vcmp.lt.s32.totalorder %v1251_v43, 4  ;;  %v336_v53 = vsub.s32 0, %v1278_v41 }
  0x5d   :  { %v251_v60 = vxor.u32 2147483648, %v250_v28  ;;  %v404_v61 = vor.u32 %v403_v52, %v402_v56  ;;  %v410_v62 = vsel %vm408_vm11, %v398_v58, 2102212464  ;;  %vm406_vm12 = vcmp.lt.s32.totalorder %v1251_v43, 2 }
  0x5e   :  { %v413_v45 = vsel %vm405_vm9, %v392_v44, %v395_v46  ;;  %v414_v15 = vsel %vm408_vm11, %v401_v50, 920167782  ;;  %v421_v57 = vshll.u32 %v381_v20, 8  ;;  %v943_v0 = vmin.u32 %v336_v53, %v1278_v41 }
  0x5f   :  { %v252_v63 = vsel %vm169_vm7, %v251_v60, %v250_v28  ;;  %v409_v30 = vsel %vm405_vm9, %v389_v51, %v392_v44  ;;  %v569_v31 = vadd.s32 3, %v153_v21  ;;  %v411_v11 = vsel %vm407_vm10, %v395_v46, %v410_v62 }
  0x60   :  { %v255_v3 = vsel %vm1257_vm8, %v1068_v13, %v252_v63  ;;  %v415_v20 = vsel %vm407_vm10, %v398_v58, %v414_v15  ;;  %v417_v4 = vsel %vm405_vm9, %v395_v46, %v398_v58  ;;  %v338_v21 = vclz %v943_v0 }
  0x61   :  { %994 = vcosq.f32 %v255_v3  ;;  %v416_v48 = vsel %vm406_vm12, %v413_v45, %v415_v20  ;;  %v418_v6 = vsel %vm408_vm11, %v404_v61, 1326507024  ;;  %vm63_vm13 = vcmp.gt.f32.partialorder %v1304_v2, 0.5 }
  0x62   :  { %996 = vsinq.f32 %v255_v3  ;;  %v419_v7 = vsel %vm407_vm10, %v401_v50, %v418_v6  ;;  %v1321_v8 = vmul.u32.u64.low %v421_v57, %v416_v48  ;;  %v1322_v10 = vmul.u32.u64.high %v421_v57, %v416_v48, %v1321_v8 }
  0x63   :  { %v256_v16 = vsel %vm1257_vm8, 0, %v254_v59  ;;  %v944_v19 = vadd.s32 4294967294, %v338_v21  ;;  %v412_v5 = vsel %vm406_vm12, %v409_v30, %v411_v11  ;;  %v420_v55 = vsel %vm406_vm12, %v417_v4, %v419_v7 }
  0x64   :  { %vm158_vm14 = vcmp.lt.s32.totalorder %v1281_v40, 2  ;;  %v1333_v23 = vand.u32 3, %v256_v16  ;;  %v1335_v24 = vmul.u32.u64.low %v421_v57, %v420_v55  ;;  %v1336_v25 = vmul.u32.u64.high %v421_v57, %v420_v55, %v1335_v24 }
  0x65   :  { %vm159_vm15 = vcmp.eq.s32.totalorder %v1281_v40, 0  ;;  %v326_v22 = vadd.s32 %v1221_v54, %v1218_v36  ;;  %vm945_vm0 = vcmp.lt.s32.totalorder %v944_v19, 0  ;;  %v570_v34 = vand.u32 3, %v569_v31 }
  0x66   :  { %v991_v9 = vpop.eup %990  ;;  %v341_v29 = vsel %vm945_vm0, 0, %v944_v19  ;;  %v428_v42 = vmul.u32 %v421_v57, %v412_v5  ;;  %v431_v43 = vadd.s32 1, %v1322_v10  ;;  %v673_v18 = vadd.s32 3, %v256_v16 }
  0x67   :  { %v993_v27 = vpop.eup %992  ;;  %vm162_vm1 = vcmp.eq.s32.totalorder %v1281_v40, 2  ;;  %v342_v33 = vsub.s32 32, %v341_v29  ;;  %v343_v35 = vshll.u32 %v1278_v41, %v341_v29  ;;  %v346_v47 = vsub.s32 4294967266, %v341_v29 }
  0x68   :  { %v160_v38 = vxor.u32 2147483648, %v993_v27  ;;  %v163_v26 = vxor.u32 2147483648, %v991_v9  ;;  %vm261_vm2 = vcmp.lt.s32.totalorder %v1333_v23, 2  ;;  %vm430_vm3 = vc.u32 %v1336_v25, %v1321_v8 }
  0x69   :  { %vm156_vm4 = vweird.f32 %v1065_v12  ;;  %v344_v36 = vshrl.u32 %v326_v22, %v342_v33  ;;  %v347_v54 = vadd.s32 127, %v346_v47  ;;  %v432_v49 = vsel %vm430_vm3, %v431_v43, %v1322_v10 }
  0x6a   :  { %vm575_vm5 = vcmp.eq.s32.totalorder %v570_v34, 2  ;;  %vm259_vm6 = vweird.f32 %v1068_v13  ;;  %vm262_vm7 = vcmp.eq.s32.totalorder %v1333_v23, 0  ;;  %vm272_vm8 = vcmp.lt.s32.totalorder %v1071_v14, 0 }
  0x6b   :  { %v433_v44 = vadd.s32 %v432_v49, %v428_v42  ;;  %vm572_vm9 = vcmp.eq.s32.totalorder %v570_v34, 0  ;;  %v674_v46 = vand.u32 3, %v673_v18  ;;  %vm265_vm10 = vcmp.eq.s32.totalorder %v1333_v23, 2 }
  0x6c   :  { %v345_v50 = vor.u32 %v344_v36, %v343_v35  ;;  %v348_v56 = vshll.u32 %v347_v54, 23  ;;  %vm571_vm11 = vcmp.lt.s32.totalorder %v570_v34, 2  ;;  %v161_v52 = vsel %vm159_vm15, %v991_v9, %v160_v38 }
  0x6d   :  { %v164_v28 = vsel %vm162_vm1, %v163_v26, %v993_v27  ;;  %v434_v41 = vadd.s32 536870912, %v433_v44  ;;  %v577_v51 = vsel %vm575_vm5, %v163_v26, %v993_v27  ;;  %v574_v60 = vsel %vm572_vm9, %v991_v9, %v160_v38 }
  0x6e   :  { %v349_v58 = vor.u32 4788187, %v348_v56  ;;  %v352_v59 = vcvt.s32.f32 %v345_v50  ;;  %v995_v53 = vpop.eup %994  ;;  %vm679_vm12 = vcmp.eq.s32.totalorder %v674_v46, 2  ;;  %v1035_v62 = vmov 0  }
  0x6f   :  { %v1370_v61 = vshrl.u32 %v434_v41, 30  ;;  %v892_v45 = vsel %vm63_vm13, 1, %v1035_v62  ;;  %v895_v15 = vsub.s32 0, %v1057_v1  ;;  %v997_v57 = vpop.eup %996  ;;  %v165_v63 = vsel %vm158_vm14, %v161_v52, %v164_v28 }
  0x70   :  { %v266_v0 = vxor.u32 2147483648, %v995_v53  ;;  %v350_v30 = vand.u32 2147483647, %v349_v58  ;;  %vm676_vm15 = vcmp.eq.s32.totalorder %v674_v46, 0  ;;  %v263_v31 = vxor.u32 2147483648, %v997_v57 }
  0x71   :  { %v436_v3 = vshll.u32 %v1370_v61, 30  ;;  %v578_v11 = vsel %vm571_vm11, %v574_v60, %v577_v51  ;;  %vm675_vm0 = vcmp.lt.s32.totalorder %v674_v46, 2  ;;  %v1381_v21 = vrot.slane %v892_v45, %v895_v15 }
  0x72   :  { %v267_v2 = vsel %vm265_vm10, %v266_v0, %v997_v57  ;;  %v353_v20 = vmul.f32 %v352_v59, %v350_v30  ;;  %v681_v4 = vsel %vm679_vm12, %v266_v0, %v997_v57  ;;  %v264_v1 = vsel %vm262_vm7, %v995_v53, %v263_v31 }
  0x73   :  { %v356_v40 = vsub.s32 4, %v1270_v37  ;;  %v437_v48 = vsub.s32 %v433_v44, %v436_v3  ;;  %v678_v6 = vsel %vm676_vm15, %v995_v53, %v263_v31  ;;  %v268_v7 = vsel %vm261_vm2, %v264_v1, %v267_v2 }
  0x74   :  { %vm1391_vm13 = vcmp.le.f32.partialorder %v270_v39, 0.7853982  ;;  %v354_v16 = vxor.u32 2147483648, %v353_v20  ;;  %v682_v19 = vsel %vm675_vm0, %v678_v6, %v681_v4  ;;  %v166_v5 = vsel %vm156_vm4, nan, %v165_v63 }
  0x75   :  { %v439_v55 = vsub.s32 0, %v437_v48  ;;  %v579_v24 = vsel %vm156_vm4, nan, %v578_v11  ;;  %v269_v39 = vsel %vm259_vm6, nan, %v268_v7  ;;  %v683_v9 = vsel %vm259_vm6, nan, %v682_v19 }
  0x76   :  { %v355_v23 = vsel %vm272_vm8, %v354_v16, %v353_v20  ;;  %vm897_vm14 = vcmp.eq.s32.totalorder %v1381_v21, 1  ;;  %v357_v12 = vsel %vm272_vm8, %v356_v40, %v1270_v37  ;;  %v429_v43 = vadd.s32 %v1321_v8, %v1336_v25 }
  0x77   :  { %v358_v22 = vsel %vm1391_vm13, %v1071_v14, %v355_v23  ;;  %v947_v34 = vmin.u32 %v439_v55, %v437_v48  ;;  %v898_v27 = vsel %vm897_vm14, %v166_v5, %v579_v24  ;;  %v899_v13 = vsel %vm897_vm14, %v269_v39, %v683_v9 }
  0x78   :  { %998 = vcosq.f32 %v358_v22  ;;  %902 = vst [vmem:[%s1402_s24] sm:$0xff] %v898_v27  ;;  %v359_v42 = vsel %vm1391_vm13, 0, %v357_v12  ;;  %903 = vst [vmem:[%s1402_s24 + $0x8] sm:$0xff] %v899_v13  ;;  %vm362_vm8 = vweird.f32 %v1071_v14  ;;  %vm375_vm9 = vcmp.lt.s32.totalorder %v1157_v17, 0 }
  0x79   :  { %1000 = vsinq.f32 %v358_v22  ;;  %v441_v29 = vclz %v947_v34  ;;  %v777_v18 = vadd.s32 3, %v359_v42  ;;  %v363_v26 = vand.u32 3, %v359_v42 }
  0x7a   :  { %v459_v45 = vsub.s32 4, %v1370_v61  ;;  %vm374_vm10 = vcmp.le.f32.partialorder %v373_v32, 0.7853982 }
  0x7b   :  { %v948_v37 = vadd.s32 4294967294, %v441_v29  ;;  %v778_v49 = vand.u32 3, %v777_v18  ;;  %vm368_vm2 = vcmp.eq.s32.totalorder %v363_v26, 2  ;;  %vm365_vm4 = vcmp.eq.s32.totalorder %v363_v26, 0 }
  0x7c   :  { %vm364_vm6 = vcmp.lt.s32.totalorder %v363_v26, 2  ;;  %v460_v31 = vsel %vm375_vm9, %v459_v45, %v1370_v61 }
  0x7d   :  { %vm949_vm1 = vcmp.lt.s32.totalorder %v948_v37, 0  ;;  %vm783_vm3 = vcmp.eq.s32.totalorder %v778_v49, 2  ;;  %vm780_vm5 = vcmp.eq.s32.totalorder %v778_v49, 0  ;;  %vm779_vm7 = vcmp.lt.s32.totalorder %v778_v49, 2 }
  0x7e   :  { %v444_v33 = vsel %vm949_vm1, 0, %v948_v37  ;;  %v462_v11 = vsel %vm374_vm10, 0, %v460_v31 }
  0x7f   :  { %v445_v35 = vsub.s32 32, %v444_v33  ;;  %v446_v47 = vshll.u32 %v437_v48, %v444_v33  ;;  %v449_v38 = vsub.s32 4294967266, %v444_v33  ;;  %v881_v2 = vadd.s32 3, %v462_v11 }
  0x80   :  { %v466_v20 = vand.u32 3, %v462_v11 }
  0x81   :  { %v447_v36 = vshrl.u32 %v429_v43, %v445_v35  ;;  %v450_v54 = vadd.s32 127, %v449_v38  ;;  %v882_v4 = vand.u32 3, %v881_v2 }
  0x82   :  { %vm471_vm11 = vcmp.eq.s32.totalorder %v466_v20, 2  ;;  %vm468_vm15 = vcmp.eq.s32.totalorder %v466_v20, 0  ;;  %vm467_vm13 = vcmp.lt.s32.totalorder %v466_v20, 2 }
  0x83   :  { %v448_v44 = vor.u32 %v447_v36, %v446_v47  ;;  %v451_v46 = vshll.u32 %v450_v54, 23  ;;  %vm887_vm12 = vcmp.eq.s32.totalorder %v882_v4, 2  ;;  %vm884_vm0 = vcmp.eq.s32.totalorder %v882_v4, 0 }
  0x84   :  { %vm883_vm1 = vcmp.lt.s32.totalorder %v882_v4, 2 }
  0x85   :  { %v999_v50 = vpop.eup %998  ;;  %v452_v56 = vor.u32 4788187, %v451_v46  ;;  %v455_v52 = vcvt.s32.f32 %v448_v44 }
  0x86   :  { %v1001_v28 = vpop.eup %1000  ;;  %v369_v8 = vxor.u32 2147483648, %v999_v50 }
  0x87   :  { %v366_v25 = vxor.u32 2147483648, %v1001_v28  ;;  %v453_v41 = vand.u32 2147483647, %v452_v56 }
  0x88   :  { %v370_v51 = vsel %vm368_vm2, %v369_v8, %v1001_v28  ;;  %v785_v58 = vsel %vm783_vm3, %v369_v8, %v1001_v28  ;;  %vm465_vm2 = vweird.f32 %v1157_v17 }
  0x89   :  { %v367_v59 = vsel %vm365_vm4, %v999_v50, %v366_v25  ;;  %v456_v60 = vmul.f32 %v455_v52, %v453_v41  ;;  %v782_v53 = vsel %vm780_vm5, %v999_v50, %v366_v25 }
  0x8a   :  { %v371_v62 = vsel %vm364_vm6, %v367_v59, %v370_v51  ;;  %v786_v15 = vsel %vm779_vm7, %v782_v53, %v785_v58 }
  0x8b   :  { %v372_v57 = vsel %vm362_vm8, nan, %v371_v62  ;;  %v457_v63 = vxor.u32 2147483648, %v456_v60  ;;  %v787_v0 = vsel %vm362_vm8, nan, %v786_v15 }
  0x8c   :  { %v900_v14 = vsel %vm897_vm14, %v372_v57, %v787_v0 }
  0x8d   :  { %v458_v30 = vsel %vm375_vm9, %v457_v63, %v456_v60  ;;  %904 = vst [vmem:[%s1402_s24 + $0x10] sm:$0xff] %v900_v14 }
  0x8e   :  { %v461_v3 = vsel %vm374_vm10, %v1157_v17, %v458_v30 }
  0x8f   :  { %1002 = vcosq.f32 %v461_v3 }
  0x90   :  { %1004 = vsinq.f32 %v461_v3 }
  0x9c   :  { %v1003_v1 = vpop.eup %1002 }
  0x9d   :  { %v1005_v32 = vpop.eup %1004  ;;  %v472_v40 = vxor.u32 2147483648, %v1003_v1 }
  0x9e   :  { %v469_v48 = vxor.u32 2147483648, %v1005_v32 }
  0x9f   :  { %v473_v61 = vsel %vm471_vm11, %v472_v40, %v1005_v32  ;;  %v889_v6 = vsel %vm887_vm12, %v472_v40, %v1005_v32 }
  0xa0   :  { %v470_v7 = vsel %vm468_vm15, %v1003_v1, %v469_v48  ;;  %v886_v10 = vsel %vm884_vm0, %v1003_v1, %v469_v48 }
  0xa1   :  { %v474_v16 = vsel %vm467_vm13, %v470_v7, %v473_v61  ;;  %v890_v19 = vsel %vm883_vm1, %v886_v10, %v889_v6 }
  0xa2   :  { %v475_v5 = vsel %vm465_vm2, nan, %v474_v16  ;;  %v891_v55 = vsel %vm465_vm2, nan, %v890_v19 }
  0xa3   :  { %v901_v24 = vsel %vm897_vm14, %v475_v5, %v891_v55 }
  0xa4   :  { %905 = vst [vmem:[%s1402_s24 + $0x18] sm:$0xff] %v901_v24 }
  0xa5   :  { %921 = vsyncpa [#allocation3], 1 }

// kernel: tpu_custom_call.1
= control target key start
LH: loop header
LB: loop body
LE: loop exit
PB: predicated region body
PF: predicated region fallthrough
CT: control target
= control target key end

     0   :  { %7 = vsyncpa [#allocation3], 0  ;;  %s995_s9 = smov [#allocation2]   ;;  %s1372_s0 = inlined_call_operand.hbm [shape: f32[1,128], index: 0, kind: input, shape index: {}]   ;;  %s1373_s1 = inlined_call_operand.vmem [shape: f32[1,128], index: 1, kind: input, shape index: {}]   ;;  %s1374_s2 = inlined_call_operand.vmem [shape: f32[1,31,128], index: 2, kind: output, shape index: {}]  }
   0x1   :  { %s14_s10 = sshll.u32 %s995_s9, 4  ;;  %s15_s10 = int_to_ptr.vmem [resolvable:$true] %s14_s10 }
   0x2   :  { %s981_s11 = scalar_lea.vmem %s15_s10, 16  ;;  %s985_s12 = scalar_lea.vmem %s15_s10, 32 }
   0x3   :  { %p982_p0 = scmp.ne.s32.totalorder %s15_s10, %s981_s11  ;;  %p986_p1 = scmp.lt.s32.totalorder %s15_s10, %s15_s10 }
   0x4   :  { %p987_p2 = scmp.lt.s32.totalorder %s985_s12, %s981_s11 }
   0x6   :  { %p988_p3 = por %p987_p2, %p986_p1 }
   0x8   :  { %p989_p4 = pnand %p988_p3, %p982_p0 }
   0xa   :  { %992 = shalt.err (!%p989_p4)
}
   0xb   :  { %17 = dma.hbm_to_vmem [thread:$0]  %s1372_s0, 16, %s15_s10, [#allocation3]  }
   0xc   :  { %993 = dma.done.wait [#allocation3], 16  }
   0xd   :  { %994 = vsyncadd [#allocation3], 4294967280  ;;  %v23_v0 = vlaneseq  ;;  %v900_v8 = vld [vmem:[#allocation2] ss:$0 sm:$0xff]  ;;  %v996_v43 = vmov 683565275  }
   0xe   :  { %v997_v45 = vmov 2475754826   ;;  %v998_v47 = vmov 2131351028   ;;  %v999_v49 = vmov 2102212464  }
   0xf   :  { %v1021_v1 = vshrl.u32 %v23_v0, 7  ;;  %v1000_v51 = vmov 920167782   ;;  %v1001_v59 = vmov 1326507024  }
  0x11   :  { %v25_v2 = vadd.s32 8, %v1021_v1  ;;  %v26_v3 = vadd.s32 16, %v1021_v1  ;;  %v31_v4 = vcvt.s32.f32 %v1021_v1  ;;  %v27_v12 = vadd.s32 24, %v1021_v1 }
  0x13   :  { %v32_v5 = vcvt.s32.f32 %v25_v2  ;;  %v33_v6 = vcvt.s32.f32 %v26_v3  ;;  %v36_v7 = vsub.f32 15.0, %v31_v4  ;;  %v34_v18 = vcvt.s32.f32 %v27_v12 }
  0x15   :  { %v37_v9 = vsub.f32 15.0, %v32_v5  ;;  %v38_v10 = vsub.f32 15.0, %v33_v6  ;;  %v1026_v11 = vmul.f32 %v900_v8, %v36_v7  ;;  %v39_v26 = vsub.f32 15.0, %v34_v18 }
  0x17   :  { %v1029_v13 = vmul.f32 %v900_v8, %v37_v9  ;;  %v53_v14 = vand.u32 2147483647, %v1026_v11  ;;  %v1032_v15 = vmul.f32 %v900_v8, %v38_v10  ;;  %v56_v16 = vand.u32 2139095040, %v1026_v11 }
  0x18   :  { %v1042_v35 = vmul.f32 %v900_v8, %v39_v26  ;;  %vm55_vm13 = vcmp.lt.s32.totalorder %v1026_v11, 0 }
  0x19   :  { %v156_v17 = vand.u32 2147483647, %v1029_v13  ;;  %v57_v19 = vshrl.u32 %v56_v16, 23  ;;  %v159_v20 = vand.u32 2139095040, %v1029_v13  ;;  %v60_v21 = vand.u32 8388607, %v53_v14 }
  0x1a   :  { %v262_v25 = vand.u32 2139095040, %v1032_v15  ;;  %v259_v40 = vand.u32 2147483647, %v1032_v15 }
  0x1b   :  { %v163_v22 = vand.u32 8388607, %v156_v17  ;;  %v901_v23 = vadd.s32 4294967169, %v57_v19  ;;  %v160_v24 = vshrl.u32 %v159_v20, 23  ;;  %v61_v30 = vor.u32 8388608, %v60_v21 }
  0x1c   :  { %v263_v29 = vshrl.u32 %v262_v25, 23 }
  0x1d   :  { %v63_v27 = vadd.s32 1, %v901_v23  ;;  %v905_v28 = vadd.s32 4294967169, %v160_v24  ;;  %v164_v31 = vor.u32 8388608, %v163_v22  ;;  %v1044_v38 = vshll.u32 %v61_v30, 8 }
  0x1e   :  { %v909_v33 = vadd.s32 4294967169, %v263_v29 }
  0x1f   :  { %vm64_vm0 = vcmp.gt.s32.totalorder %v63_v27, 0  ;;  %v166_v32 = vadd.s32 1, %v905_v28  ;;  %v1046_v39 = vshll.u32 %v164_v31, 8 }
  0x20   :  { %v65_v34 = vsel %vm64_vm0, %v63_v27, 0  ;;  %v1049_v41 = vadd.s32 1, %v909_v33 }
  0x21   :  { %v66_v36 = vshrl.u32 %v65_v34, 5  ;;  %v67_v37 = vand.u32 31, %v65_v34  ;;  %vm167_vm1 = vcmp.gt.s32.totalorder %v166_v32, 0 }
  0x22   :  { %v168_v53 = vsel %vm167_vm1, %v166_v32, 0  ;;  %vm270_vm8 = vcmp.gt.s32.totalorder %v1049_v41, 0  ;;  %vm1157_vm1 = vcmp.le.f32.partialorder %v53_v14, 0.7853982 }
  0x23   :  { %v68_v42 = vsub.s32 32, %v67_v37  ;;  %v70_v44 = vshll.u32 %v996_v43, %v67_v37  ;;  %v73_v46 = vshll.u32 %v997_v45, %v67_v37  ;;  %v76_v48 = vshll.u32 %v998_v47, %v67_v37 }
  0x24   :  { %v79_v50 = vshll.u32 %v999_v49, %v67_v37  ;;  %v82_v52 = vshll.u32 %v1000_v51, %v67_v37  ;;  %vm85_vm2 = vcmp.lt.s32.totalorder %v66_v36, 1  ;;  %vm86_vm3 = vcmp.lt.s32.totalorder %v66_v36, 2 }
  0x25   :  { %v69_v54 = vshrl.u32 %v996_v43, %v68_v42  ;;  %v71_v55 = vshrl.u32 %v997_v45, %v68_v42  ;;  %v74_v56 = vshrl.u32 %v998_v47, %v68_v42  ;;  %v77_v57 = vshrl.u32 %v999_v49, %v68_v42 }
  0x26   :  { %v80_v58 = vshrl.u32 %v1000_v51, %v68_v42  ;;  %v83_v60 = vshrl.u32 %v1001_v59, %v68_v42  ;;  %vm87_vm4 = vcmp.lt.s32.totalorder %v66_v36, 3  ;;  %vm88_vm5 = vcmp.lt.s32.totalorder %v66_v36, 4 }
  0x27   :  { %v72_v61 = vor.u32 %v71_v55, %v70_v44  ;;  %v75_v62 = vor.u32 %v74_v56, %v73_v46  ;;  %v78_v63 = vor.u32 %v77_v57, %v76_v48  ;;  %v169_v3 = vshrl.u32 %v168_v53, 5 }
  0x28   :  { %v81_v0 = vor.u32 %v80_v58, %v79_v50  ;;  %v84_v2 = vor.u32 %v83_v60, %v82_v52  ;;  %v170_v4 = vand.u32 31, %v168_v53 }
  0x29   :  { %v89_v5 = vsel %vm85_vm2, %v69_v54, %v72_v61  ;;  %v90_v6 = vsel %vm88_vm5, %v78_v63, 2102212464  ;;  %v93_v7 = vsel %vm85_vm2, %v72_v61, %v75_v62  ;;  %v97_v8 = vsel %vm85_vm2, %v75_v62, %v78_v63 }
  0x2a   :  { %v91_v9 = vsel %vm87_vm4, %v75_v62, %v90_v6  ;;  %v94_v10 = vsel %vm88_vm5, %v81_v0, 920167782  ;;  %v98_v12 = vsel %vm88_vm5, %v84_v2, 1326507024  ;;  %v171_v16 = vsub.s32 32, %v170_v4 }
  0x2b   :  { %v92_v18 = vsel %vm86_vm3, %v89_v5, %v91_v9  ;;  %v95_v19 = vsel %vm87_vm4, %v78_v63, %v94_v10  ;;  %v99_v20 = vsel %vm87_vm4, %v81_v0, %v98_v12  ;;  %v173_v21 = vshll.u32 %v996_v43, %v170_v4 }
  0x2c   :  { %v96_v22 = vsel %vm86_vm3, %v93_v7, %v95_v19  ;;  %v100_v23 = vsel %vm86_vm3, %v97_v8, %v99_v20  ;;  %v108_v24 = vmul.u32 %v1044_v38, %v92_v18  ;;  %v172_v25 = vshrl.u32 %v996_v43, %v171_v16 }
  0x2d   :  { %v1076_v26 = vmul.u32.u64.low %v1044_v38, %v100_v23  ;;  %v1077_v27 = vmul.u32.u64.high %v1044_v38, %v100_v23, %v1076_v26  ;;  %v1080_v28 = vmul.u32.u64.low %v1044_v38, %v96_v22  ;;  %v1081_v29 = vmul.u32.u64.high %v1044_v38, %v96_v22, %v1080_v28 }
  0x2e   :  { %v174_v30 = vshrl.u32 %v997_v45, %v171_v16  ;;  %v176_v31 = vshll.u32 %v997_v45, %v170_v4  ;;  %v177_v32 = vshrl.u32 %v998_v47, %v171_v16  ;;  %v179_v33 = vshll.u32 %v998_v47, %v170_v4 }
  0x2f   :  { %v180_v34 = vshrl.u32 %v999_v49, %v171_v16  ;;  %v182_v36 = vshll.u32 %v999_v49, %v170_v4  ;;  %v183_v37 = vshrl.u32 %v1000_v51, %v171_v16  ;;  %v185_v42 = vshll.u32 %v1000_v51, %v170_v4 }
  0x30   :  { %v175_v44 = vor.u32 %v174_v30, %v173_v21  ;;  %v178_v38 = vor.u32 %v177_v32, %v176_v31  ;;  %v186_v46 = vshrl.u32 %v1001_v59, %v171_v16  ;;  %vm188_vm6 = vcmp.lt.s32.totalorder %v169_v3, 1 }
  0x31   :  { %vm110_vm7 = vc.u32 %v1077_v27, %v1080_v28  ;;  %v111_v48 = vadd.s32 1, %v1081_v29  ;;  %v181_v50 = vor.u32 %v180_v34, %v179_v33  ;;  %v184_v52 = vor.u32 %v183_v37, %v182_v36 }
  0x32   :  { %v187_v53 = vor.u32 %v186_v46, %v185_v42  ;;  %vm189_vm9 = vcmp.lt.s32.totalorder %v169_v3, 2  ;;  %vm190_vm10 = vcmp.lt.s32.totalorder %v169_v3, 3  ;;  %vm191_vm11 = vcmp.lt.s32.totalorder %v169_v3, 4 }
  0x33   :  { %v112_v54 = vsel %vm110_vm7, %v111_v48, %v1081_v29  ;;  %v192_v55 = vsel %vm188_vm6, %v172_v25, %v175_v44  ;;  %v196_v56 = vsel %vm188_vm6, %v175_v44, %v178_v38  ;;  %v193_v58 = vsel %vm191_vm11, %v181_v50, 2102212464 }
  0x34   :  { %v113_v57 = vadd.s32 %v112_v54, %v108_v24  ;;  %v197_v60 = vsel %vm191_vm11, %v184_v52, 920167782  ;;  %v200_v61 = vsel %vm188_vm6, %v178_v38, %v181_v50  ;;  %v194_v62 = vsel %vm190_vm10, %v178_v38, %v193_v58 }
  0x35   :  { %v198_v63 = vsel %vm190_vm10, %v181_v50, %v197_v60  ;;  %v201_v0 = vsel %vm191_vm11, %v187_v53, 1326507024  ;;  %v266_v2 = vand.u32 8388607, %v259_v40  ;;  %v271_v7 = vsel %vm270_vm8, %v1049_v41, 0 }
  0x36   :  { %v114_v4 = vadd.s32 536870912, %v113_v57  ;;  %v199_v5 = vsel %vm189_vm9, %v196_v56, %v198_v63  ;;  %v202_v6 = vsel %vm190_vm10, %v184_v52, %v201_v0  ;;  %v195_v8 = vsel %vm189_vm9, %v192_v55, %v194_v62 }
  0x37   :  { %v203_v9 = vsel %vm189_vm9, %v200_v61, %v202_v6  ;;  %v1110_v10 = vmul.u32.u64.low %v1046_v39, %v199_v5  ;;  %v1111_v12 = vmul.u32.u64.high %v1046_v39, %v199_v5, %v1110_v10  ;;  %v365_v20 = vand.u32 2139095040, %v1042_v35 }
  0x38   :  { %v1114_v16 = vshrl.u32 %v114_v4, 30  ;;  %v1117_v18 = vmul.u32.u64.low %v1046_v39, %v203_v9  ;;  %v1118_v19 = vmul.u32.u64.high %v1046_v39, %v203_v9, %v1117_v18  ;;  %v267_v21 = vor.u32 8388608, %v266_v2 }
  0x39   :  { %v273_v22 = vand.u32 31, %v271_v7  ;;  %v211_v3 = vmul.u32 %v1046_v39, %v195_v8  ;;  %v214_v23 = vadd.s32 1, %v1111_v12  ;;  %v362_v26 = vand.u32 2147483647, %v1042_v35 }
  0x3a   :  { %v116_v41 = vshll.u32 %v1114_v16, 30  ;;  %vm213_vm12 = vc.u32 %v1118_v19, %v1110_v10  ;;  %v366_v29 = vshrl.u32 %v365_v20, 23  ;;  %v1132_v33 = vshll.u32 %v267_v21, 8 }
  0x3b   :  { %v274_v24 = vsub.s32 32, %v273_v22  ;;  %v215_v30 = vsel %vm213_vm12, %v214_v23, %v1111_v12  ;;  %v276_v31 = vshll.u32 %v996_v43, %v273_v22  ;;  %v272_v36 = vshrl.u32 %v271_v7, 5 }
  0x3c   :  { %v1124_v25 = vsub.s32 %v113_v57, %v116_v41  ;;  %v216_v34 = vadd.s32 %v215_v30, %v211_v3  ;;  %v279_v37 = vshll.u32 %v997_v45, %v273_v22  ;;  %v282_v44 = vshll.u32 %v998_v47, %v273_v22 }
  0x3d   :  { %v277_v32 = vshrl.u32 %v997_v45, %v274_v24  ;;  %v280_v42 = vshrl.u32 %v998_v47, %v274_v24  ;;  %v283_v38 = vshrl.u32 %v999_v49, %v274_v24  ;;  %v285_v46 = vshll.u32 %v999_v49, %v273_v22 }
  0x3e   :  { %v119_v39 = vsub.s32 0, %v1124_v25  ;;  %v109_v48 = vadd.s32 %v1080_v28, %v1077_v27  ;;  %v913_v52 = vadd.s32 4294967169, %v366_v29  ;;  %v369_v53 = vand.u32 8388607, %v362_v26 }
  0x3f   :  { %v217_v54 = vadd.s32 536870912, %v216_v34  ;;  %v275_v55 = vshrl.u32 %v996_v43, %v274_v24  ;;  %v278_v56 = vor.u32 %v277_v32, %v276_v31  ;;  %v286_v57 = vshrl.u32 %v1000_v51, %v274_v24 }
  0x40   :  { %v902_v50 = vmin.u32 %v119_v39, %v1124_v25  ;;  %v284_v60 = vor.u32 %v283_v38, %v282_v44  ;;  %v288_v61 = vshll.u32 %v1000_v51, %v273_v22  ;;  %v289_v27 = vshrl.u32 %v1001_v59, %v274_v24 }
  0x41   :  { %v1150_v28 = vshrl.u32 %v217_v54, 30  ;;  %v281_v62 = vor.u32 %v280_v42, %v279_v37  ;;  %v287_v63 = vor.u32 %v286_v57, %v285_v46  ;;  %vm294_vm14 = vcmp.lt.s32.totalorder %v272_v36, 4 }
  0x42   :  { %v121_v58 = vclz %v902_v50  ;;  %vm291_vm15 = vcmp.lt.s32.totalorder %v272_v36, 1  ;;  %v296_v2 = vsel %vm294_vm14, %v284_v60, 2102212464  ;;  %v372_v4 = vadd.s32 1, %v913_v52 }
  0x43   :  { %v219_v5 = vshll.u32 %v1150_v28, 30  ;;  %v290_v6 = vor.u32 %v289_v27, %v288_v61  ;;  %vm293_vm0 = vcmp.lt.s32.totalorder %v272_v36, 3  ;;  %v300_v7 = vsel %vm294_vm14, %v287_v63, 920167782 }
  0x44   :  { %v903_v0 = vadd.s32 4294967294, %v121_v58  ;;  %v139_v9 = vsub.s32 4, %v1114_v16  ;;  %vm292_vm3 = vcmp.lt.s32.totalorder %v272_v36, 2  ;;  %v295_v12 = vsel %vm291_vm15, %v275_v55, %v278_v56 }
  0x45   :  { %v1163_v20 = vsub.s32 %v216_v34, %v219_v5  ;;  %v297_v21 = vsel %vm293_vm0, %v281_v62, %v296_v2  ;;  %v299_v22 = vsel %vm291_vm15, %v278_v56, %v281_v62  ;;  %v301_v23 = vsel %vm293_vm0, %v284_v60, %v300_v7 }
  0x46   :  { %vm904_vm2 = vcmp.lt.s32.totalorder %v903_v0, 0  ;;  %v303_v29 = vsel %vm291_vm15, %v281_v62, %v284_v60  ;;  %v304_v30 = vsel %vm294_vm14, %v290_v6, 1326507024  ;;  %v370_v31 = vor.u32 8388608, %v369_v53 }
  0x47   :  { %v124_v18 = vsel %vm904_vm2, 0, %v903_v0  ;;  %v222_v24 = vsub.s32 0, %v1163_v20  ;;  %v305_v34 = vsel %vm293_vm0, %v287_v63, %v304_v30  ;;  %vm373_vm4 = vcmp.gt.s32.totalorder %v372_v4, 0 }
  0x48   :  { %v125_v41 = vsub.s32 32, %v124_v18  ;;  %v126_v3 = vshll.u32 %v1124_v25, %v124_v18  ;;  %v129_v14 = vsub.s32 4294967266, %v124_v18  ;;  %v140_v37 = vsel %vm55_vm13, %v139_v9, %v1114_v16 }
  0x49   :  { %v906_v25 = vmin.u32 %v222_v24, %v1163_v20  ;;  %v298_v42 = vsel %vm292_vm3, %v295_v12, %v297_v21  ;;  %v302_v44 = vsel %vm292_vm3, %v299_v22, %v301_v23  ;;  %v306_v50 = vsel %vm292_vm3, %v303_v29, %v305_v34 }
  0x4a   :  { %v127_v32 = vshrl.u32 %v109_v48, %v125_v41  ;;  %v130_v39 = vadd.s32 127, %v129_v14  ;;  %v374_v52 = vsel %vm373_vm4, %v372_v4, 0  ;;  %v1193_v60 = vsel %vm1157_vm1, 0, %v140_v37 }
  0x4b   :  { %v224_v48 = vclz %v906_v25  ;;  %v1181_v53 = vmul.u32.u64.low %v1132_v33, %v306_v50  ;;  %v1182_v54 = vmul.u32.u64.high %v1132_v33, %v306_v50, %v1181_v53  ;;  %v1184_v55 = vshrl.u32 %v374_v52, 5 }
  0x4c   :  { %v128_v38 = vor.u32 %v127_v32, %v126_v3  ;;  %v131_v46 = vshll.u32 %v130_v39, 23  ;;  %v1187_v57 = vmul.u32.u64.low %v1132_v33, %v302_v44  ;;  %v1188_v58 = vmul.u32.u64.high %v1132_v33, %v302_v44, %v1187_v57  ;;  %v1242_v53 = vld [vmem:[%s1373_s1] sm:$0x1] }
  0x4d   :  { %v907_v36 = vadd.s32 4294967294, %v224_v48  ;;  %v376_v61 = vand.u32 31, %v374_v52  ;;  %v1195_v27 = vshll.u32 %v370_v31, 8  ;;  %v1198_v63 = vand.u32 3, %v1193_v60 }
  0x4e   :  { %v132_v56 = vor.u32 4788187, %v131_v46  ;;  %v135_v16 = vcvt.s32.f32 %v128_v38  ;;  %v212_v0 = vadd.s32 %v1110_v10, %v1118_v19  ;;  %v242_v2 = vsub.s32 4, %v1150_v28 }
  0x4f   :  { %vm908_vm5 = vcmp.lt.s32.totalorder %v907_v36, 0  ;;  %v314_v4 = vmul.u32 %v1132_v33, %v298_v42  ;;  %vm316_vm6 = vc.u32 %v1182_v54, %v1187_v57  ;;  %v377_v5 = vsub.s32 32, %v376_v61 }
  0x50   :  { %v133_v62 = vand.u32 2147483647, %v132_v56  ;;  %v227_v7 = vsel %vm908_vm5, 0, %v907_v36  ;;  %v317_v9 = vadd.s32 1, %v1188_v58  ;;  %vm397_vm7 = vcmp.lt.s32.totalorder %v1184_v55, 4 }
  0x51   :  { %v228_v12 = vsub.s32 32, %v227_v7  ;;  %v229_v18 = vshll.u32 %v1163_v20, %v227_v7  ;;  %v232_v21 = vsub.s32 4294967266, %v227_v7  ;;  %v379_v10 = vshll.u32 %v996_v43, %v376_v61 }
  0x52   :  { %v136_v6 = vmul.f32 %v135_v16, %v133_v62  ;;  %v318_v22 = vsel %vm316_vm6, %v317_v9, %v1188_v58  ;;  %v378_v33 = vshrl.u32 %v996_v43, %v377_v5  ;;  %v380_v41 = vshrl.u32 %v997_v45, %v377_v5 }
  0x53   :  { %v230_v3 = vshrl.u32 %v212_v0, %v228_v12  ;;  %v233_v14 = vadd.s32 127, %v232_v21  ;;  %v319_v23 = vadd.s32 %v318_v22, %v314_v4  ;;  %v382_v24 = vshll.u32 %v997_v45, %v376_v61 }
  0x54   :  { %v137_v19 = vxor.u32 2147483648, %v136_v6  ;;  %vm158_vm8 = vcmp.lt.s32.totalorder %v1029_v13, 0  ;;  %v383_v20 = vshrl.u32 %v998_v47, %v377_v5  ;;  %v385_v30 = vshll.u32 %v998_v47, %v376_v61 }
  0x55   :  { %v386_v31 = vshrl.u32 %v999_v49, %v377_v5  ;;  %vm1225_vm9 = vcmp.le.f32.partialorder %v156_v17, 0.7853982  ;;  %v231_v45 = vor.u32 %v230_v3, %v229_v18  ;;  %v234_v39 = vshll.u32 %v233_v14, 23 }
  0x56   :  { %v138_v29 = vsel %vm55_vm13, %v137_v19, %v136_v6  ;;  %v320_v34 = vadd.s32 536870912, %v319_v23  ;;  %v381_v37 = vor.u32 %v380_v41, %v379_v10  ;;  %v388_v47 = vshll.u32 %v999_v49, %v376_v61 }
  0x57   :  { %v141_v43 = vsel %vm1157_vm1, %v1026_v11, %v138_v29  ;;  %v387_v25 = vor.u32 %v386_v31, %v385_v30  ;;  %v235_v42 = vor.u32 4788187, %v234_v39  ;;  %v238_v44 = vcvt.s32.f32 %v231_v45 }
  0x58   :  { %957 = vcosq.f32 %v141_v43  ;;  %v1230_v38 = vshrl.u32 %v320_v34, 30  ;;  %v384_v8 = vor.u32 %v383_v20, %v382_v24  ;;  %v389_v46 = vshrl.u32 %v1000_v51, %v377_v5 }
  0x59   :  { %959 = vsinq.f32 %v141_v43  ;;  %v391_v17 = vshll.u32 %v1000_v51, %v376_v61  ;;  %v392_v50 = vshrl.u32 %v1001_v59, %v377_v5  ;;  %v236_v52 = vand.u32 2147483647, %v235_v42 }
  0x5a   :  { %v322_v48 = vshll.u32 %v1230_v38, 30  ;;  %vm394_vm10 = vcmp.lt.s32.totalorder %v1184_v55, 1  ;;  %v399_v49 = vsel %vm397_vm7, %v387_v25, 2102212464  ;;  %v390_v56 = vor.u32 %v389_v46, %v388_v47 }
  0x5b   :  { %v393_v16 = vor.u32 %v392_v50, %v391_v17  ;;  %vm395_vm11 = vcmp.lt.s32.totalorder %v1184_v55, 2  ;;  %vm396_vm12 = vcmp.lt.s32.totalorder %v1184_v55, 3  ;;  %v239_v51 = vmul.f32 %v238_v44, %v236_v52 }
  0x5c   :  { %v1246_v59 = vsub.s32 %v319_v23, %v322_v48  ;;  %v398_v58 = vsel %vm394_vm10, %v378_v33, %v381_v37  ;;  %v558_v36 = vadd.s32 3, %v1193_v60  ;;  %v400_v61 = vsel %vm396_vm12, %v384_v8, %v399_v49 }
  0x5d   :  { %v402_v62 = vsel %vm394_vm10, %v381_v37, %v384_v8  ;;  %v403_v0 = vsel %vm397_vm7, %v390_v56, 920167782  ;;  %v407_v4 = vsel %vm397_vm7, %v393_v16, 1326507024  ;;  %vm52_vm13 = vcmp.gt.f32.partialorder %v1242_v53, 0.5 }
  0x5e   :  { %v240_v5 = vxor.u32 2147483648, %v239_v51  ;;  %v325_v6 = vsub.s32 0, %v1246_v59  ;;  %v404_v60 = vsel %vm396_vm12, %v387_v25, %v403_v0  ;;  %v406_v7 = vsel %vm394_vm10, %v384_v8, %v387_v25 }
  0x5f   :  { %vm147_vm14 = vcmp.lt.s32.totalorder %v1198_v63, 2  ;;  %v243_v9 = vsel %vm158_vm8, %v242_v2, %v1150_v28  ;;  %v408_v12 = vsel %vm396_vm12, %v390_v56, %v407_v4  ;;  %v405_v10 = vsel %vm395_vm11, %v402_v62, %v404_v60 }
  0x60   :  { %v241_v18 = vsel %vm158_vm8, %v240_v5, %v239_v51  ;;  %v910_v21 = vmin.u32 %v325_v6, %v1246_v59  ;;  %v559_v19 = vand.u32 3, %v558_v36  ;;  %vm148_vm15 = vcmp.eq.s32.totalorder %v1198_v63, 0 }
  0x61   :  { %v244_v22 = vsel %vm1225_vm9, %v1029_v13, %v241_v18  ;;  %v401_v28 = vsel %vm395_vm11, %v398_v58, %v400_v61  ;;  %v409_v2 = vsel %vm395_vm11, %v406_v7, %v408_v12  ;;  %vm145_vm0 = vweird.f32 %v1026_v11 }
  0x62   :  { %961 = vcosq.f32 %v244_v22  ;;  %v327_v33 = vclz %v910_v21  ;;  %v1288_v41 = vmul.u32.u64.low %v1195_v27, %v409_v2  ;;  %v1289_v3 = vmul.u32.u64.high %v1195_v27, %v409_v2, %v1288_v41 }
  0x63   :  { %v245_v14 = vsel %vm1225_vm9, 0, %v243_v9  ;;  %963 = vsinq.f32 %v244_v22  ;;  %v1294_v23 = vmul.u32.u64.low %v1195_v27, %v405_v10  ;;  %v1295_v24 = vmul.u32.u64.high %v1195_v27, %v405_v10, %v1294_v23 }
  0x64   :  { %vm151_vm1 = vcmp.eq.s32.totalorder %v1198_v63, 2  ;;  %v315_v55 = vadd.s32 %v1187_v57, %v1182_v54  ;;  %v911_v20 = vadd.s32 4294967294, %v327_v33  ;;  %vm564_vm2 = vcmp.eq.s32.totalorder %v559_v19, 2 }
  0x65   :  { %v958_v29 = vpop.eup %957  ;;  %v417_v43 = vmul.u32 %v1195_v27, %v401_v28  ;;  %vm560_vm3 = vcmp.lt.s32.totalorder %v559_v19, 2  ;;  %vm561_vm4 = vcmp.eq.s32.totalorder %v559_v19, 0  ;;  %vm419_vm6 = vc.u32 %v1289_v3, %v1294_v23 }
  0x66   :  { %v960_v30 = vpop.eup %959  ;;  %v152_v31 = vxor.u32 2147483648, %v958_v29  ;;  %vm912_vm5 = vcmp.lt.s32.totalorder %v911_v20, 0  ;;  %v662_v45 = vadd.s32 3, %v245_v14  ;;  %v420_v37 = vadd.s32 1, %v1295_v24 }
  0x67   :  { %v149_v32 = vxor.u32 2147483648, %v960_v30  ;;  %v330_v34 = vsel %vm912_vm5, 0, %v911_v20  ;;  %v1002_v8 = vmov 0   ;;  %v884_v17 = vsub.s32 0, %v1021_v1 }
  0x68   :  { %v153_v39 = vsel %vm151_vm1, %v152_v31, %v960_v30  ;;  %v566_v25 = vsel %vm564_vm2, %v152_v31, %v960_v30  ;;  %v331_v57 = vsub.s32 32, %v330_v34  ;;  %v332_v47 = vshll.u32 %v1246_v59, %v330_v34 }
  0x69   :  { %v150_v54 = vsel %vm148_vm15, %v958_v29, %v149_v32  ;;  %v335_v27 = vsub.s32 4294967266, %v330_v34  ;;  %v421_v42 = vsel %vm419_vm6, %v420_v37, %v1295_v24  ;;  %v563_v44 = vsel %vm561_vm4, %v958_v29, %v149_v32 }
  0x6a   :  { %v881_v46 = vsel %vm52_vm13, 1, %v1002_v8  ;;  %v154_v50 = vsel %vm147_vm14, %v150_v54, %v153_v39  ;;  %v333_v52 = vshrl.u32 %v315_v55, %v331_v57  ;;  %v422_v49 = vadd.s32 %v421_v42, %v417_v43 }
  0x6b   :  { %v336_v48 = vadd.s32 127, %v335_v27  ;;  %v249_v56 = vand.u32 3, %v245_v14  ;;  %v567_v16 = vsel %vm560_vm3, %v563_v44, %v566_v25  ;;  %v663_v51 = vand.u32 3, %v662_v45 }
  0x6c   :  { %v334_v59 = vor.u32 %v333_v52, %v332_v47  ;;  %v423_v36 = vadd.s32 536870912, %v422_v49  ;;  %v155_v61 = vsel %vm145_vm0, nan, %v154_v50  ;;  %vm248_vm7 = vweird.f32 %v1029_v13 }
  0x6d   :  { %v337_v58 = vshll.u32 %v336_v48, 23  ;;  %v1318_v53 = vrot.slane %v881_v46, %v884_v17  ;;  %v568_v0 = vsel %vm145_vm0, nan, %v567_v16  ;;  %vm251_vm8 = vcmp.eq.s32.totalorder %v249_v56, 0 }
  0x6e   :  { %v341_v63 = vcvt.s32.f32 %v334_v59  ;;  %v1320_v62 = vshrl.u32 %v423_v36, 30  ;;  %vm254_vm9 = vcmp.eq.s32.totalorder %v249_v56, 2  ;;  %vm665_vm10 = vcmp.eq.s32.totalorder %v663_v51, 0 }
  0x6f   :  { %v338_v1 = vor.u32 4788187, %v337_v58  ;;  %v962_v4 = vpop.eup %961  ;;  %vm886_vm11 = vcmp.eq.s32.totalorder %v1318_v53, 1  ;;  %vm668_vm12 = vcmp.eq.s32.totalorder %v663_v51, 2  ;;  %vm250_vm13 = vcmp.lt.s32.totalorder %v249_v56, 2 }
  0x70   :  { %v964_v5 = vpop.eup %963  ;;  %v255_v6 = vxor.u32 2147483648, %v962_v4  ;;  %v425_v7 = vshll.u32 %v1320_v62, 30  ;;  %vm261_vm14 = vcmp.lt.s32.totalorder %v1032_v15, 0  ;;  %v887_v11 = vsel %vm886_vm11, %v155_v61, %v568_v0 }
  0x71   :  { %v339_v60 = vand.u32 2147483647, %v338_v1  ;;  %v252_v9 = vxor.u32 2147483648, %v964_v5  ;;  %vm664_vm15 = vcmp.lt.s32.totalorder %v663_v51, 2  ;;  %891 = vst [vmem:[%s1374_s2] sm:$0xff] %v887_v11  ;;  %v345_v19 = vsub.s32 4, %v1230_v38 }
  0x72   :  { %v256_v12 = vsel %vm254_vm9, %v255_v6, %v964_v5  ;;  %v426_v21 = vsub.s32 %v422_v49, %v425_v7  ;;  %v670_v28 = vsel %vm668_vm12, %v255_v6, %v964_v5  ;;  %vm260_vm0 = vcmp.le.f32.partialorder %v259_v40, 0.7853982 }
  0x73   :  { %v342_v18 = vmul.f32 %v341_v63, %v339_v60  ;;  %v253_v10 = vsel %vm251_vm8, %v962_v4, %v252_v9  ;;  %v667_v22 = vsel %vm665_vm10, %v962_v4, %v252_v9  ;;  %v346_v20 = vsel %vm261_vm14, %v345_v19, %v1230_v38 }
  0x74   :  { %v257_v2 = vsel %vm250_vm13, %v253_v10, %v256_v12  ;;  %v428_v41 = vsub.s32 0, %v426_v21  ;;  %v671_v24 = vsel %vm664_vm15, %v667_v22, %v670_v28  ;;  %v348_v32 = vsel %vm260_vm0, 0, %v346_v20 }
  0x75   :  { %v343_v33 = vxor.u32 2147483648, %v342_v18  ;;  %v258_v14 = vsel %vm248_vm7, nan, %v257_v2  ;;  %v672_v31 = vsel %vm248_vm7, nan, %v671_v24  ;;  %v418_v38 = vadd.s32 %v1294_v23, %v1289_v3 }
  0x76   :  { %v914_v55 = vmin.u32 %v428_v41, %v426_v21  ;;  %v888_v43 = vsel %vm886_vm11, %v258_v14, %v672_v31  ;;  %v766_v34 = vadd.s32 3, %v348_v32  ;;  %v352_v47 = vand.u32 3, %v348_v32 }
  0x77   :  { %v344_v29 = vsel %vm261_vm14, %v343_v33, %v342_v18  ;;  %892 = vst [vmem:[%s1374_s2 + $0x8] sm:$0xff] %v888_v43  ;;  %vm351_vm8 = vweird.f32 %v1032_v15  ;;  %vm364_vm9 = vcmp.lt.s32.totalorder %v1042_v35, 0  ;;  %v448_v51 = vsub.s32 4, %v1320_v62 }
  0x78   :  { %v347_v30 = vsel %vm260_vm0, %v1032_v15, %v344_v29  ;;  %v430_v40 = vclz %v914_v55  ;;  %v767_v27 = vand.u32 3, %v766_v34  ;;  %vm357_vm2 = vcmp.eq.s32.totalorder %v352_v47, 2 }
  0x79   :  { %965 = vcosq.f32 %v347_v30  ;;  %vm354_vm4 = vcmp.eq.s32.totalorder %v352_v47, 0  ;;  %vm353_vm6 = vcmp.lt.s32.totalorder %v352_v47, 2  ;;  %vm363_vm10 = vcmp.le.f32.partialorder %v362_v26, 0.7853982 }
  0x7a   :  { %967 = vsinq.f32 %v347_v30  ;;  %v915_v45 = vadd.s32 4294967294, %v430_v40  ;;  %vm772_vm3 = vcmp.eq.s32.totalorder %v767_v27, 2  ;;  %vm769_vm5 = vcmp.eq.s32.totalorder %v767_v27, 0 }
  0x7b   :  { %vm768_vm7 = vcmp.lt.s32.totalorder %v767_v27, 2  ;;  %v449_v4 = vsel %vm364_vm9, %v448_v51, %v1320_v62 }
  0x7c   :  { %vm916_vm1 = vcmp.lt.s32.totalorder %v915_v45, 0  ;;  %v451_v6 = vsel %vm363_vm10, 0, %v449_v4 }
  0x7d   :  { %v433_v39 = vsel %vm916_vm1, 0, %v915_v45  ;;  %v870_v26 = vadd.s32 3, %v451_v6  ;;  %v455_v60 = vand.u32 3, %v451_v6 }
  0x7e   :  { %v434_v13 = vsub.s32 32, %v433_v39  ;;  %v435_v37 = vshll.u32 %v426_v21, %v433_v39  ;;  %v438_v25 = vsub.s32 4294967266, %v433_v39 }
  0x7f   :  { %v871_v7 = vand.u32 3, %v870_v26  ;;  %vm460_vm12 = vcmp.eq.s32.totalorder %v455_v60, 2  ;;  %vm457_vm14 = vcmp.eq.s32.totalorder %v455_v60, 0  ;;  %vm456_vm0 = vcmp.lt.s32.totalorder %v455_v60, 2 }
  0x80   :  { %v436_v54 = vshrl.u32 %v418_v38, %v434_v13  ;;  %v439_v57 = vadd.s32 127, %v438_v25 }
  0x81   :  { %vm876_vm13 = vcmp.eq.s32.totalorder %v871_v7, 2  ;;  %vm873_vm15 = vcmp.eq.s32.totalorder %v871_v7, 0  ;;  %vm872_vm1 = vcmp.lt.s32.totalorder %v871_v7, 2 }
  0x82   :  { %v437_v42 = vor.u32 %v436_v54, %v435_v37  ;;  %v440_v44 = vshll.u32 %v439_v57, 23 }
  0x84   :  { %v441_v8 = vor.u32 4788187, %v440_v44  ;;  %v444_v46 = vcvt.s32.f32 %v437_v42 }
  0x86   :  { %v966_v17 = vpop.eup %965  ;;  %v442_v23 = vand.u32 2147483647, %v441_v8 }
  0x87   :  { %v968_v50 = vpop.eup %967  ;;  %v358_v3 = vxor.u32 2147483648, %v966_v17 }
  0x88   :  { %v355_v52 = vxor.u32 2147483648, %v968_v50  ;;  %v445_v49 = vmul.f32 %v444_v46, %v442_v23 }
  0x89   :  { %v359_v48 = vsel %vm357_vm2, %v358_v3, %v968_v50  ;;  %v774_v56 = vsel %vm772_vm3, %v358_v3, %v968_v50  ;;  %vm454_vm2 = vweird.f32 %v1042_v35 }
  0x8a   :  { %v356_v16 = vsel %vm354_vm4, %v966_v17, %v355_v52  ;;  %v771_v59 = vsel %vm769_vm5, %v966_v17, %v355_v52  ;;  %v446_v36 = vxor.u32 2147483648, %v445_v49 }
  0x8b   :  { %v360_v58 = vsel %vm353_vm6, %v356_v16, %v359_v48  ;;  %v775_v61 = vsel %vm768_vm7, %v771_v59, %v774_v56 }
  0x8c   :  { %v361_v1 = vsel %vm351_vm8, nan, %v360_v58  ;;  %v776_v63 = vsel %vm351_vm8, nan, %v775_v61  ;;  %v447_v0 = vsel %vm364_vm9, %v446_v36, %v445_v49 }
  0x8d   :  { %v889_v15 = vsel %vm886_vm11, %v361_v1, %v776_v63  ;;  %v450_v5 = vsel %vm363_vm10, %v1042_v35, %v447_v0 }
  0x8e   :  { %893 = vst [vmem:[%s1374_s2 + $0x10] sm:$0xff] %v889_v15  ;;  %969 = vcosq.f32 %v450_v5 }
  0x8f   :  { %971 = vsinq.f32 %v450_v5 }
  0x9b   :  { %v970_v9 = vpop.eup %969 }
  0x9c   :  { %v972_v11 = vpop.eup %971  ;;  %v461_v12 = vxor.u32 2147483648, %v970_v9 }
  0x9d   :  { %v458_v62 = vxor.u32 2147483648, %v972_v11 }
  0x9e   :  { %v462_v18 = vsel %vm460_vm12, %v461_v12, %v972_v11  ;;  %v878_v21 = vsel %vm876_vm13, %v461_v12, %v972_v11 }
  0x9f   :  { %v459_v10 = vsel %vm457_vm14, %v970_v9, %v458_v62  ;;  %v875_v19 = vsel %vm873_vm15, %v970_v9, %v458_v62 }
  0xa0   :  { %v463_v22 = vsel %vm456_vm0, %v459_v10, %v462_v18  ;;  %v879_v28 = vsel %vm872_vm1, %v875_v19, %v878_v21 }
  0xa1   :  { %v464_v2 = vsel %vm454_vm2, nan, %v463_v22  ;;  %v880_v33 = vsel %vm454_vm2, nan, %v879_v28 }
  0xa2   :  { %v890_v41 = vsel %vm886_vm11, %v464_v2, %v880_v33 }
  0xa3   :  { %894 = vst [vmem:[%s1374_s2 + $0x18] sm:$0xff] %v890_v41 }
  0xa4   :  { %899 = vsyncpa [#allocation3], 1 }

</bundles_post_ra>
